<compile_context>
chip_gen: v7x
topology: tpu7x:2x2x1
jax: 0.10.0
libtpu: 0.0.40
codegen_flags: <defaults>
</compile_context>

<pallas_src>
import functools

import jax
import jax.numpy as jnp
from jax.experimental import pallas as pl
from jax.experimental.pallas import tpu as pltpu

DIM_FEATURES = 8
DIM_TARGET = 4
PAD = 128                      # lane-dense padded feature width
CONFIG = {
    "dropout": 0.0,            # p=0 -> F.dropout is the identity (deterministic)
    "hidden_units": [32, 32, 32],
    "train_eps": False,        # GINConv eps is initialised to 0.0 either way
    "dataset_name": "NCI1",    # -> global_add_pool
}


def _vmem_spec():
    return pl.BlockSpec(memory_space=pltpu.MemorySpace.VMEM)


# ----------------------------- Pallas kernel --------------------------------

def gin_fused_kernel(adj_ref, x_ref, pool_ref,
                     w1_ref, b1_ref, w2_ref, b2_ref, wl_ref, bl_ref,
                     out_ref, *, num_layers, epss):
    """Entire GIN forward in one program.

    Stacked (per-layer) weights live in VMEM:
      w1/w2/wl : [L, 128, 128]   b1/b2/bl : [L, 1, 128]   (zero-padded)
    For each layer (Python-unrolled, static):
      layer 0:   h = x                      (first_h: no aggregation)
      layer >0:  h = (1+eps)*x + adj @ x    (GINConv neighbor sum)
      x   = relu(relu(h @ W1 + b1) @ W2 + b2)         (MLP, BN folded)
      out += pool @ (x @ Wl + bl)     if layer == 0   (pool(linear(x)))
      out += (pool @ x) @ Wl + bl     otherwise       (linear(pool(x)))
    """
    x = x_ref[...]
    adj = adj_ref[...]
    pool = pool_ref[...]
    out = jnp.zeros(out_ref.shape, jnp.float32)

    for layer in range(num_layers):
        w1 = w1_ref[layer]
        b1 = b1_ref[layer]
        w2 = w2_ref[layer]
        b2 = b2_ref[layer]
        wl = wl_ref[layer]
        bl = bl_ref[layer]

        if layer == 0:
            h = x                                            # first_h path
        else:
            agg = jnp.dot(adj, x, preferred_element_type=jnp.float32)
            h = (1.0 + epss[layer - 1]) * x + agg            # GINConv aggregate

        h1 = jnp.maximum(
            jnp.dot(h, w1, preferred_element_type=jnp.float32) + b1, 0.0)
        x = jnp.maximum(
            jnp.dot(h1, w2, preferred_element_type=jnp.float32) + b2, 0.0)

        if layer == 0:
            # pool(linear(x)) -> bias is summed per node, matching PyTorch order
            out = out + jnp.dot(
                pool,
                jnp.dot(x, wl, preferred_element_type=jnp.float32) + bl,
                preferred_element_type=jnp.float32)
        else:
            # linear(pool(x))
            g = jnp.dot(pool, x, preferred_element_type=jnp.float32)
            out = out + jnp.dot(g, wl, preferred_element_type=jnp.float32) + bl
        # TODO(synk): F.dropout with p>0 would need pltpu.prng_*; dropout=0.0 -> identity

    out_ref[...] = out


# ------------------------------ wrappers -------------------------------------

def _pad2(a, rows, cols):
    return jnp.zeros((rows, cols), a.dtype).at[:a.shape[0], :a.shape[1]].set(a)


def _pack_params(mlps, lins):
    """Zero-pad every weight to [128,128] / [1,128] and stack per layer."""
    w1s = jnp.stack([_pad2(m[0], PAD, PAD) for m in mlps])
    b1s = jnp.stack([_pad2(m[1], 1, PAD) for m in mlps])
    w2s = jnp.stack([_pad2(m[2], PAD, PAD) for m in mlps])
    b2s = jnp.stack([_pad2(m[3], 1, PAD) for m in mlps])
    wls = jnp.stack([_pad2(l[0], PAD, PAD) for l in lins])
    bls = jnp.stack([_pad2(l[1], 1, PAD) for l in lins])
    return w1s, b1s, w2s, b2s, wls, bls


def gin_forward(x, adj, pool_mat, mlps, lins, epss):
    n = x.shape[0]
    num_graphs = pool_mat.shape[0]
    x_pad = _pad2(x, n, PAD)
    w1s, b1s, w2s, b2s, wls, bls = _pack_params(mlps, lins)

    kernel = functools.partial(
        gin_fused_kernel,
        num_layers=len(mlps),
        epss=tuple(float(e) for e in epss),
    )
    out_pad = pl.pallas_call(
        kernel,
        out_shape=jax.ShapeDtypeStruct((num_graphs, PAD), jnp.float32),
        in_specs=[_vmem_spec()] * 9,
        out_specs=_vmem_spec(),
        compiler_params=pltpu.CompilerParams(vmem_limit_bytes=16 << 20),
    )(adj, x_pad, pool_mat, w1s, b1s, w2s, b2s, wls, bls)
    return out_pad[:, :DIM_TARGET]


# --------------------------- parameters (glue) -------------------------------

def init_params(key):
    """Deterministic synthetic params.  BatchNorm1d (eval) folded into Linear."""
    emb = [CONFIG["hidden_units"][0]] + CONFIG["hidden_units"]
    mlps, lins, epss = [], [], []

    def lin_bn(ks, din, dout):
        w = jax.random.normal(ks[0], (din, dout), jnp.float32) * 0.1
        b = jax.random.normal(ks[1], (dout,), jnp.float32) * 0.1
        gamma = 1.0 + 0.1 * jax.random.normal(ks[2], (dout,), jnp.float32)
        beta = 0.1 * jax.random.normal(ks[3], (dout,), jnp.float32)
        mean = 0.1 * jax.random.normal(ks[4], (dout,), jnp.float32)
        var = jax.random.uniform(ks[5], (dout,), jnp.float32, 0.5, 1.5)
        s = gamma * jax.lax.rsqrt(var + 1e-5)
        return w * s[None, :], ((b - mean) * s + beta).reshape(1, dout)

    for layer, out_dim in enumerate(emb):
        in_dim = DIM_FEATURES if layer == 0 else emb[layer - 1]
        key, *ks = jax.random.split(key, 13)
        w1, b1 = lin_bn(ks[0:6], in_dim, out_dim)
        w2, b2 = lin_bn(ks[6:12], out_dim, out_dim)
        mlps.append((w1, b1, w2, b2))
        key, kw, kb = jax.random.split(key, 3)
        wl = jax.random.normal(kw, (out_dim, DIM_TARGET), jnp.float32) * 0.1
        bl = (jax.random.normal(kb, (DIM_TARGET,), jnp.float32) * 0.1).reshape(1, DIM_TARGET)
        lins.append((wl, bl))
        if layer > 0:
            epss.append(0.0)  # GINConv eps initial value (train_eps=False)
    return mlps, lins, epss


# ------------------------------- reference ------------------------------------

def reference_forward(x, adj, pool_mat, mlps, lins, epss):
    out = 0.0
    for layer in range(len(mlps)):
        w1, b1, w2, b2 = mlps[layer]
        wl, bl = lins[layer]
        if layer == 0:
            x = jnp.maximum(jnp.maximum(x @ w1 + b1, 0.0) @ w2 + b2, 0.0)
            out = out + pool_mat @ (x @ wl + bl)
        else:
            h = (1.0 + epss[layer - 1]) * x + adj @ x
            x = jnp.maximum(jnp.maximum(h @ w1 + b1, 0.0) @ w2 + b2, 0.0)
            out = out + (pool_mat @ x) @ wl + bl
    return out


# ------------------------------ graph (glue) ----------------------------------

def build_graph():
    nodes_per_graph, num_graphs = 16, 8
    n = nodes_per_graph * num_graphs                                # 128 nodes
    src, dst = [], []
    for g in range(num_graphs):
        off = g * nodes_per_graph
        for i in range(nodes_per_graph):  # bidirectional ring within each graph
            j = (i + 1) % nodes_per_graph
            src += [off + i, off + j]
            dst += [off + j, off + i]
    edge_index = jnp.array([src, dst], dtype=jnp.int32)             # [2, 256]
    batch = jnp.array(sum([[g] * nodes_per_graph for g in range(num_graphs)], []),
                      dtype=jnp.int32)                              # [128]
    adj = jnp.zeros((n, n), jnp.float32).at[edge_index[1], edge_index[0]].add(1.0)
    pool_mat = jnp.zeros((num_graphs, n), jnp.float32).at[
        batch, jnp.arange(n)].add(1.0)                              # global_add_pool
    return edge_index, batch, adj, pool_mat, n


if __name__ == "__main__":
    key = jax.random.PRNGKey(0)
    key, kx, kp = jax.random.split(key, 3)

    edge_index, batch, adj, pool_mat, n = build_graph()
    x = jax.random.normal(kx, (n, DIM_FEATURES), jnp.float32)       # data.x
    mlps, lins, epss = init_params(kp)

    out = gin_forward(x, adj, pool_mat, mlps, lins, epss)
    out = jax.block_until_ready(out)

    ref = reference_forward(x, adj, pool_mat, mlps, lins, epss)
    assert out.shape == (pool_mat.shape[0], DIM_TARGET)
    assert jnp.allclose(out, ref, atol=1e-4, rtol=1e-4)
    print("KERNEL_OK")
</pallas_src>

<mosaic_0001>
module attributes {stable_mosaic.version = 11 : i64} {
  func.func @gin_fused_kernel(%arg0: memref<128x128xf32, #tpu.memory_space<vmem>>, %arg1: memref<128x128xf32, #tpu.memory_space<vmem>>, %arg2: memref<8x128xf32, #tpu.memory_space<vmem>>, %arg3: memref<4x128x128xf32, #tpu.memory_space<vmem>>, %arg4: memref<4x1x128xf32, #tpu.memory_space<vmem>>, %arg5: memref<4x128x128xf32, #tpu.memory_space<vmem>>, %arg6: memref<4x1x128xf32, #tpu.memory_space<vmem>>, %arg7: memref<4x128x128xf32, #tpu.memory_space<vmem>>, %arg8: memref<4x1x128xf32, #tpu.memory_space<vmem>>, %arg9: memref<8x128xf32, #tpu.memory_space<vmem>>) attributes {dimension_semantics = [], scalar_prefetch = 0 : i64, scratch_operands = 0 : i64, tpu.core_type = #tpu.core_type<tc>} {
    %c0 = arith.constant 0 : index
    %c0_0 = arith.constant 0 : index
    %0 = vector.load %arg1[%c0, %c0_0] : memref<128x128xf32, #tpu.memory_space<vmem>>, vector<128x128xf32>
    %c0_1 = arith.constant 0 : index
    %c0_2 = arith.constant 0 : index
    %1 = vector.load %arg0[%c0_1, %c0_2] : memref<128x128xf32, #tpu.memory_space<vmem>>, vector<128x128xf32>
    %c0_3 = arith.constant 0 : index
    %c0_4 = arith.constant 0 : index
    %2 = vector.load %arg2[%c0_3, %c0_4] : memref<8x128xf32, #tpu.memory_space<vmem>>, vector<8x128xf32>
    %cst = arith.constant 0.000000e+00 : f32
    %3 = vector.broadcast %cst : f32 to vector<8x128xf32>
    %c0_5 = arith.constant 0 : index
    %c0_6 = arith.constant 0 : index
    %c0_7 = arith.constant 0 : index
    %4 = vector.load %arg3[%c0_5, %c0_6, %c0_7] : memref<4x128x128xf32, #tpu.memory_space<vmem>>, vector<1x128x128xf32>
    %5 = vector.shape_cast %4 : vector<1x128x128xf32> to vector<128x128xf32>
    %c0_8 = arith.constant 0 : index
    %c0_9 = arith.constant 0 : index
    %c0_10 = arith.constant 0 : index
    %6 = vector.load %arg4[%c0_8, %c0_9, %c0_10] : memref<4x1x128xf32, #tpu.memory_space<vmem>>, vector<1x1x128xf32>
    %7 = vector.shape_cast %6 : vector<1x1x128xf32> to vector<1x128xf32>
    %c0_11 = arith.constant 0 : index
    %c0_12 = arith.constant 0 : index
    %c0_13 = arith.constant 0 : index
    %8 = vector.load %arg5[%c0_11, %c0_12, %c0_13] : memref<4x128x128xf32, #tpu.memory_space<vmem>>, vector<1x128x128xf32>
    %9 = vector.shape_cast %8 : vector<1x128x128xf32> to vector<128x128xf32>
    %c0_14 = arith.constant 0 : index
    %c0_15 = arith.constant 0 : index
    %c0_16 = arith.constant 0 : index
    %10 = vector.load %arg6[%c0_14, %c0_15, %c0_16] : memref<4x1x128xf32, #tpu.memory_space<vmem>>, vector<1x1x128xf32>
    %11 = vector.shape_cast %10 : vector<1x1x128xf32> to vector<1x128xf32>
    %c0_17 = arith.constant 0 : index
    %c0_18 = arith.constant 0 : index
    %c0_19 = arith.constant 0 : index
    %12 = vector.load %arg7[%c0_17, %c0_18, %c0_19] : memref<4x128x128xf32, #tpu.memory_space<vmem>>, vector<1x128x128xf32>
    %13 = vector.shape_cast %12 : vector<1x128x128xf32> to vector<128x128xf32>
    %c0_20 = arith.constant 0 : index
    %c0_21 = arith.constant 0 : index
    %c0_22 = arith.constant 0 : index
    %14 = vector.load %arg8[%c0_20, %c0_21, %c0_22] : memref<4x1x128xf32, #tpu.memory_space<vmem>>, vector<1x1x128xf32>
    %15 = vector.shape_cast %14 : vector<1x1x128xf32> to vector<1x128xf32>
    %cst_23 = arith.constant dense<0.000000e+00> : vector<128x128xf32>
    %16 = tpu.matmul %0, %5, %cst_23 {dimension_numbers = #tpu.dot_dimension_numbers<[1], [0], [0], [1], [0, 0, 1, 1], [], []>} : vector<128x128xf32>, vector<128x128xf32>, vector<128x128xf32> -> vector<128x128xf32>
    %17 = vector.broadcast %7 : vector<1x128xf32> to vector<128x128xf32>
    %18 = arith.addf %16, %17 : vector<128x128xf32>
    %cst_24 = arith.constant 0.000000e+00 : f32
    %19 = vector.broadcast %cst_24 : f32 to vector<128x128xf32>
    %20 = arith.maximumf %18, %19 : vector<128x128xf32>
    %cst_25 = arith.constant dense<0.000000e+00> : vector<128x128xf32>
    %21 = tpu.matmul %20, %9, %cst_25 {dimension_numbers = #tpu.dot_dimension_numbers<[1], [0], [0], [1], [0, 0, 1, 1], [], []>} : vector<128x128xf32>, vector<128x128xf32>, vector<128x128xf32> -> vector<128x128xf32>
    %22 = vector.broadcast %11 : vector<1x128xf32> to vector<128x128xf32>
    %23 = arith.addf %21, %22 : vector<128x128xf32>
    %cst_26 = arith.constant 0.000000e+00 : f32
    %24 = vector.broadcast %cst_26 : f32 to vector<128x128xf32>
    %25 = arith.maximumf %23, %24 : vector<128x128xf32>
    %cst_27 = arith.constant dense<0.000000e+00> : vector<128x128xf32>
    %26 = tpu.matmul %25, %13, %cst_27 {dimension_numbers = #tpu.dot_dimension_numbers<[1], [0], [0], [1], [0, 0, 1, 1], [], []>} : vector<128x128xf32>, vector<128x128xf32>, vector<128x128xf32> -> vector<128x128xf32>
    %27 = vector.broadcast %15 : vector<1x128xf32> to vector<128x128xf32>
    %28 = arith.addf %26, %27 : vector<128x128xf32>
    %cst_28 = arith.constant dense<0.000000e+00> : vector<8x128xf32>
    %29 = tpu.matmul %2, %28, %cst_28 {dimension_numbers = #tpu.dot_dimension_numbers<[1], [0], [0], [1], [0, 0, 1, 1], [], []>} : vector<8x128xf32>, vector<128x128xf32>, vector<8x128xf32> -> vector<8x128xf32>
    %30 = arith.addf %3, %29 : vector<8x128xf32>
    %c1 = arith.constant 1 : index
    %c0_29 = arith.constant 0 : index
    %c0_30 = arith.constant 0 : index
    %31 = vector.load %arg3[%c1, %c0_29, %c0_30] : memref<4x128x128xf32, #tpu.memory_space<vmem>>, vector<1x128x128xf32>
    %32 = vector.shape_cast %31 : vector<1x128x128xf32> to vector<128x128xf32>
    %c1_31 = arith.constant 1 : index
    %c0_32 = arith.constant 0 : index
    %c0_33 = arith.constant 0 : index
    %33 = vector.load %arg4[%c1_31, %c0_32, %c0_33] : memref<4x1x128xf32, #tpu.memory_space<vmem>>, vector<1x1x128xf32>
    %34 = vector.shape_cast %33 : vector<1x1x128xf32> to vector<1x128xf32>
    %c1_34 = arith.constant 1 : index
    %c0_35 = arith.constant 0 : index
    %c0_36 = arith.constant 0 : index
    %35 = vector.load %arg5[%c1_34, %c0_35, %c0_36] : memref<4x128x128xf32, #tpu.memory_space<vmem>>, vector<1x128x128xf32>
    %36 = vector.shape_cast %35 : vector<1x128x128xf32> to vector<128x128xf32>
    %c1_37 = arith.constant 1 : index
    %c0_38 = arith.constant 0 : index
    %c0_39 = arith.constant 0 : index
    %37 = vector.load %arg6[%c1_37, %c0_38, %c0_39] : memref<4x1x128xf32, #tpu.memory_space<vmem>>, vector<1x1x128xf32>
    %38 = vector.shape_cast %37 : vector<1x1x128xf32> to vector<1x128xf32>
    %c1_40 = arith.constant 1 : index
    %c0_41 = arith.constant 0 : index
    %c0_42 = arith.constant 0 : index
    %39 = vector.load %arg7[%c1_40, %c0_41, %c0_42] : memref<4x128x128xf32, #tpu.memory_space<vmem>>, vector<1x128x128xf32>
    %40 = vector.shape_cast %39 : vector<1x128x128xf32> to vector<128x128xf32>
    %c1_43 = arith.constant 1 : index
    %c0_44 = arith.constant 0 : index
    %c0_45 = arith.constant 0 : index
    %41 = vector.load %arg8[%c1_43, %c0_44, %c0_45] : memref<4x1x128xf32, #tpu.memory_space<vmem>>, vector<1x1x128xf32>
    %42 = vector.shape_cast %41 : vector<1x1x128xf32> to vector<1x128xf32>
    %cst_46 = arith.constant dense<0.000000e+00> : vector<128x128xf32>
    %43 = tpu.matmul %1, %25, %cst_46 {dimension_numbers = #tpu.dot_dimension_numbers<[1], [0], [0], [1], [0, 0, 1, 1], [], []>} : vector<128x128xf32>, vector<128x128xf32>, vector<128x128xf32> -> vector<128x128xf32>
    %cst_47 = arith.constant 1.000000e+00 : f32
    %44 = vector.broadcast %cst_47 : f32 to vector<128x128xf32>
    %45 = arith.mulf %44, %25 : vector<128x128xf32>
    %46 = arith.addf %45, %43 : vector<128x128xf32>
    %cst_48 = arith.constant dense<0.000000e+00> : vector<128x128xf32>
    %47 = tpu.matmul %46, %32, %cst_48 {dimension_numbers = #tpu.dot_dimension_numbers<[1], [0], [0], [1], [0, 0, 1, 1], [], []>} : vector<128x128xf32>, vector<128x128xf32>, vector<128x128xf32> -> vector<128x128xf32>
    %48 = vector.broadcast %34 : vector<1x128xf32> to vector<128x128xf32>
    %49 = arith.addf %47, %48 : vector<128x128xf32>
    %cst_49 = arith.constant 0.000000e+00 : f32
    %50 = vector.broadcast %cst_49 : f32 to vector<128x128xf32>
    %51 = arith.maximumf %49, %50 : vector<128x128xf32>
    %cst_50 = arith.constant dense<0.000000e+00> : vector<128x128xf32>
    %52 = tpu.matmul %51, %36, %cst_50 {dimension_numbers = #tpu.dot_dimension_numbers<[1], [0], [0], [1], [0, 0, 1, 1], [], []>} : vector<128x128xf32>, vector<128x128xf32>, vector<128x128xf32> -> vector<128x128xf32>
    %53 = vector.broadcast %38 : vector<1x128xf32> to vector<128x128xf32>
    %54 = arith.addf %52, %53 : vector<128x128xf32>
    %cst_51 = arith.constant 0.000000e+00 : f32
    %55 = vector.broadcast %cst_51 : f32 to vector<128x128xf32>
    %56 = arith.maximumf %54, %55 : vector<128x128xf32>
    %cst_52 = arith.constant dense<0.000000e+00> : vector<8x128xf32>
    %57 = tpu.matmul %2, %56, %cst_52 {dimension_numbers = #tpu.dot_dimension_numbers<[1], [0], [0], [1], [0, 0, 1, 1], [], []>} : vector<8x128xf32>, vector<128x128xf32>, vector<8x128xf32> -> vector<8x128xf32>
    %cst_53 = arith.constant dense<0.000000e+00> : vector<8x128xf32>
    %58 = tpu.matmul %57, %40, %cst_53 {dimension_numbers = #tpu.dot_dimension_numbers<[1], [0], [0], [1], [0, 0, 1, 1], [], []>} : vector<8x128xf32>, vector<128x128xf32>, vector<8x128xf32> -> vector<8x128xf32>
    %59 = arith.addf %30, %58 : vector<8x128xf32>
    %60 = vector.broadcast %42 : vector<1x128xf32> to vector<8x128xf32>
    %61 = arith.addf %59, %60 : vector<8x128xf32>
    %c2 = arith.constant 2 : index
    %c0_54 = arith.constant 0 : index
    %c0_55 = arith.constant 0 : index
    %62 = vector.load %arg3[%c2, %c0_54, %c0_55] : memref<4x128x128xf32, #tpu.memory_space<vmem>>, vector<1x128x128xf32>
    %63 = vector.shape_cast %62 : vector<1x128x128xf32> to vector<128x128xf32>
    %c2_56 = arith.constant 2 : index
    %c0_57 = arith.constant 0 : index
    %c0_58 = arith.constant 0 : index
    %64 = vector.load %arg4[%c2_56, %c0_57, %c0_58] : memref<4x1x128xf32, #tpu.memory_space<vmem>>, vector<1x1x128xf32>
    %65 = vector.shape_cast %64 : vector<1x1x128xf32> to vector<1x128xf32>
    %c2_59 = arith.constant 2 : index
    %c0_60 = arith.constant 0 : index
    %c0_61 = arith.constant 0 : index
    %66 = vector.load %arg5[%c2_59, %c0_60, %c0_61] : memref<4x128x128xf32, #tpu.memory_space<vmem>>, vector<1x128x128xf32>
    %67 = vector.shape_cast %66 : vector<1x128x128xf32> to vector<128x128xf32>
    %c2_62 = arith.constant 2 : index
    %c0_63 = arith.constant 0 : index
    %c0_64 = arith.constant 0 : index
    %68 = vector.load %arg6[%c2_62, %c0_63, %c0_64] : memref<4x1x128xf32, #tpu.memory_space<vmem>>, vector<1x1x128xf32>
    %69 = vector.shape_cast %68 : vector<1x1x128xf32> to vector<1x128xf32>
    %c2_65 = arith.constant 2 : index
    %c0_66 = arith.constant 0 : index
    %c0_67 = arith.constant 0 : index
    %70 = vector.load %arg7[%c2_65, %c0_66, %c0_67] : memref<4x128x128xf32, #tpu.memory_space<vmem>>, vector<1x128x128xf32>
    %71 = vector.shape_cast %70 : vector<1x128x128xf32> to vector<128x128xf32>
    %c2_68 = arith.constant 2 : index
    %c0_69 = arith.constant 0 : index
    %c0_70 = arith.constant 0 : index
    %72 = vector.load %arg8[%c2_68, %c0_69, %c0_70] : memref<4x1x128xf32, #tpu.memory_space<vmem>>, vector<1x1x128xf32>
    %73 = vector.shape_cast %72 : vector<1x1x128xf32> to vector<1x128xf32>
    %cst_71 = arith.constant dense<0.000000e+00> : vector<128x128xf32>
    %74 = tpu.matmul %1, %56, %cst_71 {dimension_numbers = #tpu.dot_dimension_numbers<[1], [0], [0], [1], [0, 0, 1, 1], [], []>} : vector<128x128xf32>, vector<128x128xf32>, vector<128x128xf32> -> vector<128x128xf32>
    %cst_72 = arith.constant 1.000000e+00 : f32
    %75 = vector.broadcast %cst_72 : f32 to vector<128x128xf32>
    %76 = arith.mulf %75, %56 : vector<128x128xf32>
    %77 = arith.addf %76, %74 : vector<128x128xf32>
    %cst_73 = arith.constant dense<0.000000e+00> : vector<128x128xf32>
    %78 = tpu.matmul %77, %63, %cst_73 {dimension_numbers = #tpu.dot_dimension_numbers<[1], [0], [0], [1], [0, 0, 1, 1], [], []>} : vector<128x128xf32>, vector<128x128xf32>, vector<128x128xf32> -> vector<128x128xf32>
    %79 = vector.broadcast %65 : vector<1x128xf32> to vector<128x128xf32>
    %80 = arith.addf %78, %79 : vector<128x128xf32>
    %cst_74 = arith.constant 0.000000e+00 : f32
    %81 = vector.broadcast %cst_74 : f32 to vector<128x128xf32>
    %82 = arith.maximumf %80, %81 : vector<128x128xf32>
    %cst_75 = arith.constant dense<0.000000e+00> : vector<128x128xf32>
    %83 = tpu.matmul %82, %67, %cst_75 {dimension_numbers = #tpu.dot_dimension_numbers<[1], [0], [0], [1], [0, 0, 1, 1], [], []>} : vector<128x128xf32>, vector<128x128xf32>, vector<128x128xf32> -> vector<128x128xf32>
    %84 = vector.broadcast %69 : vector<1x128xf32> to vector<128x128xf32>
    %85 = arith.addf %83, %84 : vector<128x128xf32>
    %cst_76 = arith.constant 0.000000e+00 : f32
    %86 = vector.broadcast %cst_76 : f32 to vector<128x128xf32>
    %87 = arith.maximumf %85, %86 : vector<128x128xf32>
    %cst_77 = arith.constant dense<0.000000e+00> : vector<8x128xf32>
    %88 = tpu.matmul %2, %87, %cst_77 {dimension_numbers = #tpu.dot_dimension_numbers<[1], [0], [0], [1], [0, 0, 1, 1], [], []>} : vector<8x128xf32>, vector<128x128xf32>, vector<8x128xf32> -> vector<8x128xf32>
    %cst_78 = arith.constant dense<0.000000e+00> : vector<8x128xf32>
    %89 = tpu.matmul %88, %71, %cst_78 {dimension_numbers = #tpu.dot_dimension_numbers<[1], [0], [0], [1], [0, 0, 1, 1], [], []>} : vector<8x128xf32>, vector<128x128xf32>, vector<8x128xf32> -> vector<8x128xf32>
    %90 = arith.addf %61, %89 : vector<8x128xf32>
    %91 = vector.broadcast %73 : vector<1x128xf32> to vector<8x128xf32>
    %92 = arith.addf %90, %91 : vector<8x128xf32>
    %c3 = arith.constant 3 : index
    %c0_79 = arith.constant 0 : index
    %c0_80 = arith.constant 0 : index
    %93 = vector.load %arg3[%c3, %c0_79, %c0_80] : memref<4x128x128xf32, #tpu.memory_space<vmem>>, vector<1x128x128xf32>
    %94 = vector.shape_cast %93 : vector<1x128x128xf32> to vector<128x128xf32>
    %c3_81 = arith.constant 3 : index
    %c0_82 = arith.constant 0 : index
    %c0_83 = arith.constant 0 : index
    %95 = vector.load %arg4[%c3_81, %c0_82, %c0_83] : memref<4x1x128xf32, #tpu.memory_space<vmem>>, vector<1x1x128xf32>
    %96 = vector.shape_cast %95 : vector<1x1x128xf32> to vector<1x128xf32>
    %c3_84 = arith.constant 3 : index
    %c0_85 = arith.constant 0 : index
    %c0_86 = arith.constant 0 : index
    %97 = vector.load %arg5[%c3_84, %c0_85, %c0_86] : memref<4x128x128xf32, #tpu.memory_space<vmem>>, vector<1x128x128xf32>
    %98 = vector.shape_cast %97 : vector<1x128x128xf32> to vector<128x128xf32>
    %c3_87 = arith.constant 3 : index
    %c0_88 = arith.constant 0 : index
    %c0_89 = arith.constant 0 : index
    %99 = vector.load %arg6[%c3_87, %c0_88, %c0_89] : memref<4x1x128xf32, #tpu.memory_space<vmem>>, vector<1x1x128xf32>
    %100 = vector.shape_cast %99 : vector<1x1x128xf32> to vector<1x128xf32>
    %c3_90 = arith.constant 3 : index
    %c0_91 = arith.constant 0 : index
    %c0_92 = arith.constant 0 : index
    %101 = vector.load %arg7[%c3_90, %c0_91, %c0_92] : memref<4x128x128xf32, #tpu.memory_space<vmem>>, vector<1x128x128xf32>
    %102 = vector.shape_cast %101 : vector<1x128x128xf32> to vector<128x128xf32>
    %c3_93 = arith.constant 3 : index
    %c0_94 = arith.constant 0 : index
    %c0_95 = arith.constant 0 : index
    %103 = vector.load %arg8[%c3_93, %c0_94, %c0_95] : memref<4x1x128xf32, #tpu.memory_space<vmem>>, vector<1x1x128xf32>
    %104 = vector.shape_cast %103 : vector<1x1x128xf32> to vector<1x128xf32>
    %cst_96 = arith.constant dense<0.000000e+00> : vector<128x128xf32>
    %105 = tpu.matmul %1, %87, %cst_96 {dimension_numbers = #tpu.dot_dimension_numbers<[1], [0], [0], [1], [0, 0, 1, 1], [], []>} : vector<128x128xf32>, vector<128x128xf32>, vector<128x128xf32> -> vector<128x128xf32>
    %cst_97 = arith.constant 1.000000e+00 : f32
    %106 = vector.broadcast %cst_97 : f32 to vector<128x128xf32>
    %107 = arith.mulf %106, %87 : vector<128x128xf32>
    %108 = arith.addf %107, %105 : vector<128x128xf32>
    %cst_98 = arith.constant dense<0.000000e+00> : vector<128x128xf32>
    %109 = tpu.matmul %108, %94, %cst_98 {dimension_numbers = #tpu.dot_dimension_numbers<[1], [0], [0], [1], [0, 0, 1, 1], [], []>} : vector<128x128xf32>, vector<128x128xf32>, vector<128x128xf32> -> vector<128x128xf32>
    %110 = vector.broadcast %96 : vector<1x128xf32> to vector<128x128xf32>
    %111 = arith.addf %109, %110 : vector<128x128xf32>
    %cst_99 = arith.constant 0.000000e+00 : f32
    %112 = vector.broadcast %cst_99 : f32 to vector<128x128xf32>
    %113 = arith.maximumf %111, %112 : vector<128x128xf32>
    %cst_100 = arith.constant dense<0.000000e+00> : vector<128x128xf32>
    %114 = tpu.matmul %113, %98, %cst_100 {dimension_numbers = #tpu.dot_dimension_numbers<[1], [0], [0], [1], [0, 0, 1, 1], [], []>} : vector<128x128xf32>, vector<128x128xf32>, vector<128x128xf32> -> vector<128x128xf32>
    %115 = vector.broadcast %100 : vector<1x128xf32> to vector<128x128xf32>
    %116 = arith.addf %114, %115 : vector<128x128xf32>
    %cst_101 = arith.constant 0.000000e+00 : f32
    %117 = vector.broadcast %cst_101 : f32 to vector<128x128xf32>
    %118 = arith.maximumf %116, %117 : vector<128x128xf32>
    %cst_102 = arith.constant dense<0.000000e+00> : vector<8x128xf32>
    %119 = tpu.matmul %2, %118, %cst_102 {dimension_numbers = #tpu.dot_dimension_numbers<[1], [0], [0], [1], [0, 0, 1, 1], [], []>} : vector<8x128xf32>, vector<128x128xf32>, vector<8x128xf32> -> vector<8x128xf32>
    %cst_103 = arith.constant dense<0.000000e+00> : vector<8x128xf32>
    %120 = tpu.matmul %119, %102, %cst_103 {dimension_numbers = #tpu.dot_dimension_numbers<[1], [0], [0], [1], [0, 0, 1, 1], [], []>} : vector<8x128xf32>, vector<128x128xf32>, vector<8x128xf32> -> vector<8x128xf32>
    %121 = arith.addf %92, %120 : vector<8x128xf32>
    %122 = vector.broadcast %104 : vector<1x128xf32> to vector<8x128xf32>
    %123 = arith.addf %121, %122 : vector<8x128xf32>
    %c0_104 = arith.constant 0 : index
    %c0_105 = arith.constant 0 : index
    %124 = vector.load %arg9[%c0_104, %c0_105] : memref<8x128xf32, #tpu.memory_space<vmem>>, vector<8x128xf32>
    tpu.vector_store %arg9[%c0_104, %c0_105], %123 {strides = array<i32>} : memref<8x128xf32, #tpu.memory_space<vmem>>, vector<8x128xf32>,
    return
  }
}

</mosaic_0001>

<bundles_post_ra>
// kernel: tpu_custom_call.1
= control target key start
LH: loop header
LB: loop body
LE: loop exit
PB: predicated region body
PF: predicated region fallthrough
CT: control target
= control target key end

     0   :  { %14 = vsyncpa [#allocation3], 0  ;;  %s5906_s0 = inlined_call_operand.hbm [shape: f32[128,128], index: 0, kind: input, shape index: {}]   ;;  %s5907_s1 = inlined_call_operand.hbm [shape: f32[128,128], index: 1, kind: input, shape index: {}]   ;;  %s5908_s2 = inlined_call_operand.hbm [shape: f32[8,128], index: 2, kind: input, shape index: {}]   ;;  %s5909_s3 = inlined_call_operand.hbm [shape: f32[4,128,128], index: 3, kind: input, shape index: {}]   ;;  %s5910_s4 = inlined_call_operand.vmem [shape: f32[4,1,128], index: 4, kind: input, shape index: {}]   ;;  %s5911_s5 = inlined_call_operand.hbm [shape: f32[4,128,128], index: 5, kind: input, shape index: {}]   ;;  %s5912_s6 = inlined_call_operand.vmem [shape: f32[4,1,128], index: 6, kind: input, shape index: {}]   ;;  %s5913_s7 = inlined_call_operand.hbm [shape: f32[4,128,128], index: 7, kind: input, shape index: {}]   ;;  %s5914_s8 = inlined_call_operand.vmem [shape: f32[4,1,128], index: 8, kind: input, shape index: {}]   ;;  %s5915_s9 = inlined_call_operand.hbm [shape: f32[8,128], index: 9, kind: output, shape index: {}]  }
   0x1   :  { %15 = vsyncpa [#allocation6], 0 }
   0x2   :  { %16 = vsyncpa [#allocation9], 0 }
   0x3   :  { %17 = vsyncpa [#allocation12], 0 }
   0x4   :  { %18 = vsyncpa [#allocation4], 0  ;;  %s5056_s30 = smov [#allocation5]   ;;  %s5057_s11 = smov [#allocation8]  }
   0x5   :  { %s36_s10 = sshll.u32 %s5056_s30, 4  ;;  %s58_s12 = sshll.u32 %s5057_s11, 4  ;;  %s37_s10 = int_to_ptr.vmem [resolvable:$true] %s36_s10  ;;  %s5118_s12 = int_to_ptr.vmem [resolvable:$true] %s58_s12 }
   0x6   :  { %s4892_s15 = scalar_lea.hbm %s5907_s1, 2048 }
   0x7   :  { %p4893_p0 = scmp.ne.s32.totalorder %s5907_s1, %s4892_s15  ;;  %p4896_p1 = scmp.lt.u32.totalorder %s4892_s15, %s5907_s1 }
   0x9   :  { %p4898_p2 = pnand %p4896_p1, %p4893_p0 }
   0xb   :  { %4901 = shalt.err (!%p4898_p2)
}
   0xc   :  { %s4902_s20 = scalar_lea.vmem %s37_s10, 2048  ;;  %p4907_p4 = scmp.lt.s32.totalorder %s37_s10, %s37_s10 }
   0xd   :  { %p4903_p3 = scmp.ne.s32.totalorder %s37_s10, %s4902_s20  ;;  %p4908_p5 = scmp.lt.s32.totalorder %s4902_s20, %s4902_s20 }
   0xf   :  { %p4909_p6 = por %p4908_p5, %p4907_p4 }
  0x11   :  { %p4910_p7 = pnand %p4909_p6, %p4903_p3 }
  0x13   :  { %4913 = shalt.err (!%p4910_p7)
}
  0x14   :  { %s5058_s21 = smov 128   ;;  %s5059_s22 = smov 8  }
  0x15   :  { %42 = dma.hbm_to_vmem [thread:$0]  %s5907_s1, 2048, %s37_s10, [#allocation6], %s5058_s21, %s5058_s21, %s5059_s22  }
  0x16   :  { %s4914_s27 = scalar_lea.hbm %s5909_s3, 8192 }
  0x17   :  { %p4915_p8 = scmp.ne.s32.totalorder %s5909_s3, %s4914_s27  ;;  %p4918_p9 = scmp.lt.u32.totalorder %s4914_s27, %s5909_s3 }
  0x19   :  { %p4920_p10 = pnand %p4918_p9, %p4915_p8 }
  0x1b   :  { %4923 = shalt.err (!%p4920_p10)
}
  0x1c   :  { %s4924_s13 = scalar_lea.vmem %s5118_s12, 8192  ;;  %p4929_p12 = scmp.lt.s32.totalorder %s5118_s12, %s5118_s12 }
  0x1d   :  { %p4925_p11 = scmp.ne.s32.totalorder %s5118_s12, %s4924_s13  ;;  %p4930_p13 = scmp.lt.s32.totalorder %s4924_s13, %s4924_s13 }
  0x1f   :  { %p4931_p0 = por %p4930_p13, %p4929_p12 }
  0x21   :  { %p4932_p1 = pnand %p4931_p0, %p4925_p11 }
  0x23   :  { %4935 = shalt.err (!%p4932_p1)
}
  0x24   :  { %64 = dma.hbm_to_vmem [thread:$0]  %s5909_s3, 8192, %s5118_s12, [#allocation9], %s5058_s21, %s5058_s21, %s5059_s22  }
  0x25   :  { %s5060_s14 = smov [#allocation2]   ;;  %s5061_s16 = smov [#allocation7]  }
  0x26   :  { %s24_s15 = sshll.u32 %s5060_s14, 4  ;;  %s49_s17 = sshll.u32 %s5061_s16, 4  ;;  %s25_s15 = int_to_ptr.vmem [resolvable:$true] %s24_s15  ;;  %s50_s17 = int_to_ptr.vmem [resolvable:$true] %s49_s17 }
  0x27   :  { %s4936_s20 = scalar_lea.hbm %s5906_s0, 2048 }
  0x28   :  { %p4937_p2 = scmp.ne.s32.totalorder %s5906_s0, %s4936_s20  ;;  %p4940_p3 = scmp.lt.u32.totalorder %s4936_s20, %s5906_s0 }
  0x2a   :  { %p4942_p4 = pnand %p4940_p3, %p4937_p2 }
  0x2c   :  { %4945 = shalt.err (!%p4942_p4)
}
  0x2d   :  { %s4946_s3 = scalar_lea.vmem %s25_s15, 2048  ;;  %p4951_p6 = scmp.lt.s32.totalorder %s25_s15, %s25_s15 }
  0x2e   :  { %p4947_p5 = scmp.ne.s32.totalorder %s25_s15, %s4946_s3  ;;  %p4952_p7 = scmp.lt.s32.totalorder %s4946_s3, %s4946_s3 }
  0x30   :  { %p4953_p8 = por %p4952_p7, %p4951_p6 }
  0x32   :  { %p4954_p9 = pnand %p4953_p8, %p4947_p5 }
  0x34   :  { %4957 = shalt.err (!%p4954_p9)
}
  0x35   :  { %30 = dma.hbm_to_vmem [thread:$0]  %s5906_s0, 2048, %s25_s15, [#allocation3], %s5058_s21, %s5058_s21, %s5059_s22  }
  0x36   :  { %s4958_s30 = scalar_lea.hbm %s5908_s2, 128 }
  0x37   :  { %p4959_p10 = scmp.ne.s32.totalorder %s5908_s2, %s4958_s30  ;;  %p4962_p11 = scmp.lt.u32.totalorder %s4958_s30, %s5908_s2 }
  0x39   :  { %p4964_p12 = pnand %p4962_p11, %p4959_p10 }
  0x3b   :  { %4967 = shalt.err (!%p4964_p12)
}
  0x3c   :  { %s4968_s14 = scalar_lea.vmem %s50_s17, 128  ;;  %p4973_p0 = scmp.lt.s32.totalorder %s50_s17, %s50_s17 }
  0x3d   :  { %p4969_p13 = scmp.ne.s32.totalorder %s50_s17, %s4968_s14  ;;  %p4974_p1 = scmp.lt.s32.totalorder %s4968_s14, %s4968_s14 }
  0x3f   :  { %p4975_p2 = por %p4974_p1, %p4973_p0 }
  0x41   :  { %p4976_p3 = pnand %p4975_p2, %p4969_p13 }
  0x43   :  { %4979 = shalt.err (!%p4976_p3)
}
  0x44   :  { %52 = dma.hbm_to_vmem [thread:$0]  %s5908_s2, 128, %s50_s17, [#allocation6]  }
  0x45   :  { %s5062_s16 = smov [#allocation10]   ;;  %s5063_s19 = smov [#allocation11]  }
  0x46   :  { %s72_s18 = sshll.u32 %s5062_s16, 4  ;;  %s86_s20 = sshll.u32 %s5063_s19, 4  ;;  %s73_s18 = int_to_ptr.vmem [resolvable:$true] %s72_s18  ;;  %s5182_s20 = int_to_ptr.vmem [resolvable:$true] %s86_s20 }
  0x47   :  { %s4980_s25 = scalar_lea.hbm %s5911_s5, 8192 }
  0x48   :  { %p4981_p4 = scmp.ne.s32.totalorder %s5911_s5, %s4980_s25  ;;  %p4984_p5 = scmp.lt.u32.totalorder %s4980_s25, %s5911_s5 }
  0x4a   :  { %p4986_p6 = pnand %p4984_p5, %p4981_p4 }
  0x4c   :  { %4989 = shalt.err (!%p4986_p6)
}
  0x4d   :  { %s4990_s2 = scalar_lea.vmem %s73_s18, 8192  ;;  %p4995_p8 = scmp.lt.s32.totalorder %s73_s18, %s73_s18 }
  0x4e   :  { %p4991_p7 = scmp.ne.s32.totalorder %s73_s18, %s4990_s2  ;;  %p4996_p9 = scmp.lt.s32.totalorder %s4990_s2, %s4990_s2 }
  0x50   :  { %p4997_p10 = por %p4996_p9, %p4995_p8 }
  0x52   :  { %p4998_p11 = pnand %p4997_p10, %p4991_p7 }
  0x54   :  { %5001 = shalt.err (!%p4998_p11)
}
  0x55   :  { %78 = dma.hbm_to_vmem [thread:$0]  %s5911_s5, 8192, %s73_s18, [#allocation9], %s5058_s21, %s5058_s21, %s5059_s22  }
  0x56   :  { %s5002_s11 = scalar_lea.hbm %s5913_s7, 8192 }
  0x57   :  { %p5003_p12 = scmp.ne.s32.totalorder %s5913_s7, %s5002_s11  ;;  %p5006_p13 = scmp.lt.u32.totalorder %s5002_s11, %s5913_s7 }
  0x59   :  { %p5008_p0 = pnand %p5006_p13, %p5003_p12 }
  0x5b   :  { %5011 = shalt.err (!%p5008_p0)
}
  0x5c   :  { %s5012_s0 = scalar_lea.vmem %s5182_s20, 8192  ;;  %p5017_p2 = scmp.lt.s32.totalorder %s5182_s20, %s5182_s20 }
  0x5d   :  { %p5013_p1 = scmp.ne.s32.totalorder %s5182_s20, %s5012_s0  ;;  %p5018_p3 = scmp.lt.s32.totalorder %s5012_s0, %s5012_s0 }
  0x5f   :  { %p5019_p4 = por %p5018_p3, %p5017_p2 }
  0x61   :  { %p5020_p5 = pnand %p5019_p4, %p5013_p1 }
  0x63   :  { %5023 = shalt.err (!%p5020_p5)
}
  0x64   :  { %92 = dma.hbm_to_vmem [thread:$0]  %s5913_s7, 8192, %s5182_s20, [#allocation12], %s5058_s21, %s5058_s21, %s5059_s22  }
  0x65   :  { %5046 = dma.done.wait [#allocation3], 2048  }
  0x66   :  { %5047 = vsyncadd [#allocation3], 4294965248 }
  0x67   :  { %5048 = dma.done.wait [#allocation6], 2176  }
  0x68   :  { %5049 = vsyncadd [#allocation6], 4294965120 }
  0x69   :  { %5050 = dma.done.wait [#allocation9], 16384  }
  0x6a   :  { %5051 = vsyncadd [#allocation9], 4294950912 }
  0x6b   :  { %5052 = dma.done.wait [#allocation12], 8192  }
  0x6c   :  { %5053 = vsyncadd [#allocation12], 4294959104  ;;  %v146_v0 = vld [vmem:[#allocation8] sm:$0xff]  ;;  %v147_v1 = vld [vmem:[#allocation8 + $0x8] sm:$0xff]  ;;  %vm5065_vm0 = vmmov 0   ;;  %s5067_s10 = smov [#allocation13]  }
  0x6d   :  { %v148_v2 = vld [vmem:[#allocation8 + $0x10] sm:$0xff]  ;;  %v4311_v3 = vpack.c.bf16 %v147_v1, %v146_v0  ;;  %v149_v4 = vld [vmem:[#allocation8 + $0x18] sm:$0xff]  ;;  %v150_v6 = vld [vmem:[#allocation8 + $0x20] sm:$0xff]  ;;  %s2858_s14 = sshll.u32 %s5067_s10, 4  ;;  %s2859_s14 = int_to_ptr.vmem [resolvable:$true] %s2858_s14 }
  0x6e   :  { %v4315_v5 = vpack.c.bf16 %v149_v4, %v148_v2  ;;  %v151_v7 = vld [vmem:[#allocation8 + $0x28] sm:$0xff]  ;;  %v113_v9 = vld [vmem:[#allocation5] sm:$0xff]  ;;  %v152_v10 = vld [vmem:[#allocation8 + $0x30] sm:$0xff]  ;;  %s5024_s0 = scalar_lea.vmem %s2859_s14, 128  ;;  %p5029_p7 = scmp.lt.s32.totalorder %s2859_s14, %s2859_s14 }
  0x6f   :  { %4312 = vmatprep.subr.bf16.mxu0 %v4311_v3  ;;  %v4319_v8 = vpack.c.bf16 %v151_v7, %v150_v6  ;;  %v153_v11 = vld [vmem:[#allocation8 + $0x38] sm:$0xff]  ;;  %3426 = vmatprep.mubr.f32.mxu0 %v113_v9  ;;  %v154_v13 = vld [vmem:[#allocation8 + $0x40] sm:$0xff]  ;;  %v155_v14 = vld [vmem:[#allocation8 + $0x48] sm:$0xff]  ;;  %p5025_p6 = scmp.ne.s32.totalorder %s2859_s14, %s5024_s0  ;;  %p5030_p8 = scmp.lt.s32.totalorder %s5024_s0, %s5024_s0 }
  0x70   :  { %4314 = vmatpush3.bf16.msra.mxu0 %v4311_v3  ;;  %v4323_v12 = vpack.c.bf16 %v153_v11, %v152_v10  ;;  %v163_v15 = vld [vmem:[#allocation10] sm:$0xff]  ;;  %v164_v16 = vld [vmem:[#allocation10 + $0x8] sm:$0xff]  ;;  %v165_v17 = vld [vmem:[#allocation10 + $0x10] sm:$0xff]  ;;  %v4327_v21 = vpack.c.bf16 %v155_v14, %v154_v13 }
  0x71   :  { %4316 = vmatprep.subr.bf16.mxu0 %v4315_v5  ;;  %v166_v18 = vld [vmem:[#allocation10 + $0x18] sm:$0xff]  ;;  %v4343_v19 = vpack.c.bf16 %v164_v16, %v163_v15  ;;  %v167_v22 = vld [vmem:[#allocation10 + $0x20] sm:$0xff]  ;;  %v168_v23 = vld [vmem:[#allocation10 + $0x28] sm:$0xff]  ;;  %p5031_p9 = por %p5030_p8, %p5029_p7 }
  0x72   :  { %v4347_v20 = vpack.c.bf16 %v166_v18, %v165_v17  ;;  %v156_v24 = vld [vmem:[#allocation8 + $0x50] sm:$0xff]  ;;  %v157_v25 = vld [vmem:[#allocation8 + $0x58] sm:$0xff]  ;;  %v4351_v26 = vpack.c.bf16 %v168_v23, %v167_v22  ;;  %v158_v30 = vld [vmem:[#allocation8 + $0x60] sm:$0xff] }
  0x73   :  { %4344 = vmatprep.subr.bf16.mxu1 %v4343_v19  ;;  %v4331_v27 = vpack.c.bf16 %v157_v25, %v156_v24  ;;  %v169_v28 = vld [vmem:[#allocation10 + $0x30] sm:$0xff]  ;;  %v170_v29 = vld [vmem:[#allocation10 + $0x38] sm:$0xff]  ;;  %v159_v31 = vld [vmem:[#allocation8 + $0x68] sm:$0xff]  ;;  %p5032_p10 = pnand %p5031_p9, %p5025_p6 }
  0x74   :  { %4318 = vmatpush3.bf16.msra.mxu0 %v4315_v5  ;;  %4346 = vmatpush3.bf16.msra.mxu1 %v4343_v19  ;;  %v4355_v32 = vpack.c.bf16 %v170_v29, %v169_v28  ;;  %v4335_v33 = vpack.c.bf16 %v159_v31, %v158_v30  ;;  %v171_v34 = vld [vmem:[#allocation10 + $0x40] sm:$0xff]  ;;  %v172_v35 = vld [vmem:[#allocation10 + $0x48] sm:$0xff]  ;;  %v160_v36 = vld [vmem:[#allocation8 + $0x70] sm:$0xff] }
  0x75   :  { %4320 = vmatprep.subr.bf16.mxu0 %v4319_v8  ;;  %4348 = vmatprep.subr.bf16.mxu1 %v4347_v20  ;;  %v161_v37 = vld [vmem:[#allocation8 + $0x78] sm:$0xff]  ;;  %v4359_v38 = vpack.c.bf16 %v172_v35, %v171_v34  ;;  %v173_v40 = vld [vmem:[#allocation10 + $0x50] sm:$0xff]  ;;  %v175_v43 = vld [vmem:[#allocation10 + $0x60] sm:$0xff] }
  0x76   :  { %v4339_v39 = vpack.c.bf16 %v161_v37, %v160_v36  ;;  %v174_v41 = vld [vmem:[#allocation10 + $0x58] sm:$0xff]  ;;  %v176_v44 = vld [vmem:[#allocation10 + $0x68] sm:$0xff]  ;;  %v114_v45 = vld [vmem:[#allocation5 + $0x8] sm:$0xff] }
  0x77   :  { %v4363_v42 = vpack.c.bf16 %v174_v41, %v173_v40  ;;  %v4367_v46 = vpack.c.bf16 %v176_v44, %v175_v43  ;;  %v115_v47 = vld [vmem:[#allocation5 + $0x10] sm:$0xff]  ;;  %v116_v48 = vld [vmem:[#allocation5 + $0x18] sm:$0xff]  ;;  %v117_v49 = vld [vmem:[#allocation5 + $0x20] sm:$0xff] }
  0x78   :  { %4322 = vmatpush3.bf16.msra.mxu0 %v4319_v8  ;;  %4350 = vmatpush3.bf16.msra.mxu1 %v4347_v20  ;;  %v118_v50 = vld [vmem:[#allocation5 + $0x28] sm:$0xff]  ;;  %v119_v51 = vld [vmem:[#allocation5 + $0x30] sm:$0xff]  ;;  %v120_v52 = vld [vmem:[#allocation5 + $0x38] sm:$0xff] }
  0x79   :  { %4324 = vmatprep.subr.bf16.mxu0 %v4323_v12  ;;  %4352 = vmatprep.subr.bf16.mxu1 %v4351_v26  ;;  %v121_v53 = vld [vmem:[#allocation5 + $0x40] sm:$0xff]  ;;  %v122_v54 = vld [vmem:[#allocation5 + $0x48] sm:$0xff]  ;;  %v123_v55 = vld [vmem:[#allocation5 + $0x50] sm:$0xff] }
  0x7a   :  { %v124_v56 = vld [vmem:[#allocation5 + $0x58] sm:$0xff]  ;;  %v125_v57 = vld [vmem:[#allocation5 + $0x60] sm:$0xff]  ;;  %v126_v58 = vld [vmem:[#allocation5 + $0x68] sm:$0xff] }
  0x7b   :  { %v127_v59 = vld [vmem:[#allocation5 + $0x70] sm:$0xff]  ;;  %v128_v60 = vld [vmem:[#allocation5 + $0x78] sm:$0xff]  ;;  %v178_v62 = vld [vmem:[#allocation10 + $0x78] sm:$0xff] }
  0x7c   :  { %4326 = vmatpush3.bf16.msra.mxu0 %v4323_v12  ;;  %4354 = vmatpush3.bf16.msra.mxu1 %v4351_v26  ;;  %v177_v61 = vld [vmem:[#allocation10 + $0x70] sm:$0xff]  ;;  %v180_v0 = vld [vmem:[#allocation11] sm:$0xff]  ;;  %v181_v1 = vld [vmem:[#allocation11 + $0x8] sm:$0xff] }
  0x7d   :  { %4328 = vmatprep.subr.bf16.mxu0 %v4327_v21  ;;  %4356 = vmatprep.subr.bf16.mxu1 %v4355_v32  ;;  %v4371_v63 = vpack.c.bf16 %v178_v62, %v177_v61  ;;  %v182_v2 = vld [vmem:[#allocation11 + $0x10] sm:$0xff]  ;;  %v4375_v3 = vpack.c.bf16 %v181_v1, %v180_v0  ;;  %v183_v4 = vld [vmem:[#allocation11 + $0x18] sm:$0xff]  ;;  %v184_v6 = vld [vmem:[#allocation11 + $0x20] sm:$0xff] }
  0x7e   :  { %v4379_v5 = vpack.c.bf16 %v183_v4, %v182_v2  ;;  %v185_v7 = vld [vmem:[#allocation11 + $0x28] sm:$0xff]  ;;  %v186_v9 = vld [vmem:[#allocation11 + $0x30] sm:$0xff]  ;;  %v187_v10 = vld [vmem:[#allocation11 + $0x38] sm:$0xff] }
  0x7f   :  { %v4383_v8 = vpack.c.bf16 %v185_v7, %v184_v6  ;;  %v4387_v11 = vpack.c.bf16 %v187_v10, %v186_v9  ;;  %v188_v12 = vld [vmem:[#allocation11 + $0x40] sm:$0xff]  ;;  %v189_v13 = vld [vmem:[#allocation11 + $0x48] sm:$0xff]  ;;  %v190_v15 = vld [vmem:[#allocation11 + $0x50] sm:$0xff] }
  0x80   :  { %4330 = vmatpush3.bf16.msra.mxu0 %v4327_v21  ;;  %4358 = vmatpush3.bf16.msra.mxu1 %v4355_v32  ;;  %v4391_v14 = vpack.c.bf16 %v189_v13, %v188_v12  ;;  %v191_v16 = vld [vmem:[#allocation11 + $0x58] sm:$0xff]  ;;  %v192_v18 = vld [vmem:[#allocation11 + $0x60] sm:$0xff]  ;;  %v193_v19 = vld [vmem:[#allocation11 + $0x68] sm:$0xff] }
  0x81   :  { %4332 = vmatprep.subr.bf16.mxu0 %v4331_v27  ;;  %4360 = vmatprep.subr.bf16.mxu1 %v4359_v38  ;;  %v4395_v17 = vpack.c.bf16 %v191_v16, %v190_v15  ;;  %v4399_v20 = vpack.c.bf16 %v193_v19, %v192_v18  ;;  %v2870_v21 = vld [vmem:[%s5910_s4] ss:$0 sm:$0xff]  ;;  %v194_v6 = vld [vmem:[#allocation11 + $0x70] sm:$0xff] }
  0x82   :  { %v195_v7 = vld [vmem:[#allocation11 + $0x78] sm:$0xff] }
  0x83   :  { %v5222_v9 = vld [vmem:[#allocation2] sm:$0xff] }
  0x84   :  { %4334 = vmatpush3.bf16.msra.mxu0 %v4331_v27  ;;  %4362 = vmatpush3.bf16.msra.mxu1 %v4359_v38  ;;  %v5228_v10 = vld [vmem:[%s5912_s6] ss:$0 sm:$0xff] }
  0x85   :  { %4336 = vmatprep.subr.bf16.mxu0 %v4335_v33  ;;  %4364 = vmatprep.subr.bf16.mxu1 %v4363_v42 }
  0x88   :  { %4338 = vmatpush3.bf16.msra.mxu0 %v4335_v33  ;;  %4366 = vmatpush3.bf16.msra.mxu1 %v4363_v42 }
  0x89   :  { %4340 = vmatprep.subr.bf16.mxu0 %v4339_v39  ;;  %4368 = vmatprep.subr.bf16.mxu1 %v4367_v46 }
  0x8c   :  { %4342 = vmatpush3.bf16.msra.mxu0 %v4339_v39  ;;  %4370 = vmatpush3.bf16.msra.mxu1 %v4367_v46 }
  0x8d   :  { %4372 = vmatprep.subr.bf16.mxu1 %v4371_v63  ;;  %4376 = vmatprep.subr.bf16.mxu0 %v4375_v3 }
  0x8f   :  { %3427 = vmatmul.mubr.f32.vlgmr.msra.gmra.mrb[0].mxu0 %v114_v45 }
  0x90   :  { %3429 = vmatprep.mubr.f32.mxu0 %v115_v47  ;;  %4374 = vmatpush3.bf16.msra.mxu1 %v4371_v63 }
  0x91   :  { %4378 = vmatpush3.bf16.msra.mxu0 %v4375_v3 }
  0x92   :  { %4380 = vmatprep.subr.bf16.mxu0 %v4379_v5 }
  0x93   :  { %3430 = vmatmul.mubr.f32.gmra.mrb[2].mxu0 %v116_v48 }
  0x94   :  { %3432 = vmatprep.mubr.f32.mxu0 %v117_v49 }
  0x95   :  { %4382 = vmatpush3.bf16.msra.mxu0 %v4379_v5 }
  0x96   :  { %4384 = vmatprep.subr.bf16.mxu0 %v4383_v8 }
  0x97   :  { %3433 = vmatmul.mubr.f32.gmra.mrb[4].mxu0 %v118_v50 }
  0x98   :  { %3435 = vmatprep.mubr.f32.mxu0 %v119_v51 }
  0x99   :  { %4386 = vmatpush3.bf16.msra.mxu0 %v4383_v8  ;;  %v4403_v8 = vpack.c.bf16 %v195_v7, %v194_v6  ;;  %v5318_v6 = vld [vmem:[#allocation2 + $0x20] sm:$0xff]  ;;  %v5322_v7 = vld [vmem:[#allocation2 + $0x28] sm:$0xff] }
  0x9a   :  { %4388 = vmatprep.subr.bf16.mxu0 %v4387_v11 }
  0x9b   :  { %3436 = vmatmul.mubr.f32.gmra.mrb[6].mxu0 %v120_v52 }
  0x9c   :  { %3438 = vmatprep.mubr.f32.mxu0 %v121_v53 }
  0x9d   :  { %4390 = vmatpush3.bf16.msra.mxu0 %v4387_v11 }
  0x9e   :  { %4392 = vmatprep.subr.bf16.mxu0 %v4391_v14 }
  0x9f   :  { %3439 = vmatmul.mubr.f32.gmra.mrb[8].mxu0 %v122_v54 }
  0xa0   :  { %3441 = vmatprep.mubr.f32.mxu0 %v123_v55 }
  0xa1   :  { %4394 = vmatpush3.bf16.msra.mxu0 %v4391_v14 }
  0xa2   :  { %4396 = vmatprep.subr.bf16.mxu0 %v4395_v17 }
  0xa3   :  { %3442 = vmatmul.mubr.f32.gmra.mrb[10].mxu0 %v124_v56 }
  0xa4   :  { %3444 = vmatprep.mubr.f32.mxu0 %v125_v57 }
  0xa5   :  { %4398 = vmatpush3.bf16.msra.mxu0 %v4395_v17 }
  0xa6   :  { %4400 = vmatprep.subr.bf16.mxu0 %v4399_v20 }
  0xa7   :  { %3445 = vmatmul.mubr.f32.gmra.mrb[12].mxu0 %v126_v58 }
  0xa8   :  { %3447 = vmatprep.mubr.f32.mxu0 %v127_v59 }
  0xa9   :  { %4402 = vmatpush3.bf16.msra.mxu0 %v4399_v20 }
  0xaa   :  { %4404 = vmatprep.subr.bf16.mxu0 %v4403_v8 }
  0xab   :  { %3448 = vmatmul.mubr.f32.gmra.mrb[14].mxu0 %v128_v60 }
  0xad   :  { %4406 = vmatpush3.bf16.msra.mxu0 %v4403_v8  ;;  %v5324_v8 = vld [vmem:[#allocation2 + $0x30] sm:$0xff] }
 0x162   :  { %v3428_v22 = vpop.f32.mrb[0].mxu0 }
 0x163   :  { %v275_v23 = vadd.f32 %v3428_v22, %v2870_v21  ;;  %v269_v24 = vpop.f32.mrb[1].mxu0 }
 0x164   :  { %v270_v25 = vadd.f32 %v2870_v21, %v269_v24 }
 0x165   :  { %v349_v28 = vmax.f32 %v275_v23, 0.0 }
 0x166   :  { %v3431_v26 = vpop.f32.mrb[2].mxu0  ;;  %v348_v27 = vmax.f32 %v270_v25, 0.0 }
 0x167   :  { %v285_v29 = vadd.f32 %v3431_v26, %v2870_v21  ;;  %v279_v30 = vpop.f32.mrb[3].mxu0 }
 0x168   :  { %v280_v31 = vadd.f32 %v2870_v21, %v279_v30  ;;  %3482 = vmatprep.mubr.f32.mxu1 %v348_v27 }
 0x169   :  { %3483 = vmatmul.mubr.f32.vlgmr.msra.gmra.mrb[0].mxu1 %v349_v28  ;;  %v351_v34 = vmax.f32 %v285_v29, 0.0 }
 0x16a   :  { %v350_v32 = vmax.f32 %v280_v31, 0.0  ;;  %v3434_v33 = vpop.f32.mrb[4].mxu0 }
 0x16b   :  { %v295_v35 = vadd.f32 %v3434_v33, %v2870_v21  ;;  %v289_v36 = vpop.f32.mrb[5].mxu0 }
 0x16c   :  { %v290_v37 = vadd.f32 %v2870_v21, %v289_v36  ;;  %3485 = vmatprep.mubr.f32.mxu1 %v350_v32 }
 0x16d   :  { %3486 = vmatmul.mubr.f32.gmra.mrb[2].mxu1 %v351_v34  ;;  %v353_v40 = vmax.f32 %v295_v35, 0.0 }
 0x16e   :  { %v352_v38 = vmax.f32 %v290_v37, 0.0  ;;  %v3437_v39 = vpop.f32.mrb[6].mxu0 }
 0x16f   :  { %v305_v41 = vadd.f32 %v3437_v39, %v2870_v21  ;;  %v299_v42 = vpop.f32.mrb[7].mxu0 }
 0x170   :  { %v300_v43 = vadd.f32 %v2870_v21, %v299_v42  ;;  %3488 = vmatprep.mubr.f32.mxu1 %v352_v38 }
 0x171   :  { %3489 = vmatmul.mubr.f32.gmra.mrb[4].mxu1 %v353_v40  ;;  %v355_v46 = vmax.f32 %v305_v41, 0.0 }
 0x172   :  { %v354_v44 = vmax.f32 %v300_v43, 0.0  ;;  %v3440_v45 = vpop.f32.mrb[8].mxu0 }
 0x173   :  { %v315_v47 = vadd.f32 %v3440_v45, %v2870_v21  ;;  %v309_v48 = vpop.f32.mrb[9].mxu0 }
 0x174   :  { %v310_v49 = vadd.f32 %v2870_v21, %v309_v48  ;;  %3491 = vmatprep.mubr.f32.mxu1 %v354_v44 }
 0x175   :  { %3492 = vmatmul.mubr.f32.gmra.mrb[6].mxu1 %v355_v46  ;;  %v357_v52 = vmax.f32 %v315_v47, 0.0 }
 0x176   :  { %v356_v50 = vmax.f32 %v310_v49, 0.0  ;;  %v3443_v51 = vpop.f32.mrb[10].mxu0 }
 0x177   :  { %v325_v53 = vadd.f32 %v3443_v51, %v2870_v21  ;;  %v319_v54 = vpop.f32.mrb[11].mxu0 }
 0x178   :  { %v320_v55 = vadd.f32 %v2870_v21, %v319_v54  ;;  %3494 = vmatprep.mubr.f32.mxu1 %v356_v50 }
 0x179   :  { %3495 = vmatmul.mubr.f32.gmra.mrb[8].mxu1 %v357_v52  ;;  %v359_v58 = vmax.f32 %v325_v53, 0.0 }
 0x17a   :  { %v358_v56 = vmax.f32 %v320_v55, 0.0  ;;  %v3446_v57 = vpop.f32.mrb[12].mxu0 }
 0x17b   :  { %v335_v59 = vadd.f32 %v3446_v57, %v2870_v21  ;;  %v329_v60 = vpop.f32.mrb[13].mxu0 }
 0x17c   :  { %v330_v61 = vadd.f32 %v2870_v21, %v329_v60  ;;  %3497 = vmatprep.mubr.f32.mxu1 %v358_v56 }
 0x17d   :  { %3498 = vmatmul.mubr.f32.gmra.mrb[10].mxu1 %v359_v58  ;;  %v361_v0 = vmax.f32 %v335_v59, 0.0 }
 0x17e   :  { %v360_v62 = vmax.f32 %v330_v61, 0.0  ;;  %v3449_v63 = vpop.f32.mrb[14].mxu0 }
 0x17f   :  { %v345_v1 = vadd.f32 %v3449_v63, %v2870_v21  ;;  %v339_v2 = vpop.f32.mrb[15].mxu0 }
 0x180   :  { %v340_v3 = vadd.f32 %v2870_v21, %v339_v2  ;;  %3500 = vmatprep.mubr.f32.mxu1 %v360_v62 }
 0x181   :  { %3501 = vmatmul.mubr.f32.gmra.mrb[12].mxu1 %v361_v0  ;;  %v363_v5 = vmax.f32 %v345_v1, 0.0 }
 0x182   :  { %v362_v4 = vmax.f32 %v340_v3, 0.0  ;;  %v5310_v3 = vld [vmem:[#allocation2 + $0x8] sm:$0xff] }
 0x184   :  { %3503 = vmatprep.mubr.f32.mxu1 %v362_v4  ;;  %v5312_v4 = vld [vmem:[#allocation2 + $0x10] sm:$0xff] }
 0x185   :  { %3504 = vmatmul.mubr.f32.gmra.mrb[14].mxu1 %v363_v5  ;;  %v5316_v5 = vld [vmem:[#allocation2 + $0x18] sm:$0xff] }
 0x186   :  { %3594 = vmatprep.mubr.f32.mxu1 %v5222_v9 }
 0x23c   :  { %v3484_v11 = vpop.f32.mrb[0].mxu1 }
 0x23d   :  { %v442_v12 = vadd.f32 %v3484_v11, %v5228_v10  ;;  %v436_v13 = vpop.f32.mrb[1].mxu1  ;;  %v5330_v11 = vld [vmem:[#allocation2 + $0x40] sm:$0xff] }
 0x23e   :  { %v437_v14 = vadd.f32 %v5228_v10, %v436_v13  ;;  %v5336_v13 = vld [vmem:[#allocation2 + $0x50] sm:$0xff] }
 0x23f   :  { %v5232_v15 = vmax.f32 %v442_v12, 0.0  ;;  %v5334_v12 = vld [vmem:[#allocation2 + $0x48] sm:$0xff] }
 0x240   :  { %v5234_v16 = vmax.f32 %v437_v14, 0.0  ;;  %v3487_v17 = vpop.f32.mrb[2].mxu1  ;;  %v5340_v14 = vld [vmem:[#allocation2 + $0x58] sm:$0xff] }
 0x241   :  { %v452_v18 = vadd.f32 %v3487_v17, %v5228_v10  ;;  %v446_v19 = vpop.f32.mrb[3].mxu1  ;;  %v5342_v17 = vld [vmem:[#allocation2 + $0x60] sm:$0xff] }
 0x242   :  { %v447_v20 = vadd.f32 %v5228_v10, %v446_v19  ;;  %3538 = vmatprep.mubr.f32.mxu0 %v5234_v16  ;;  %v4407_v21 = vpack.c.bf16 %v5232_v15, %v5234_v16  ;;  %v5348_v19 = vld [vmem:[#allocation2 + $0x70] sm:$0xff] }
 0x243   :  { %v5241_v22 = vmax.f32 %v452_v18, 0.0  ;;  %3539 = vmatmul.mubr.f32.vlgmr.msra.gmra.mrb[16].mxu0 %v5232_v15  ;;  %v5346_v18 = vld [vmem:[#allocation2 + $0x68] sm:$0xff] }
 0x244   :  { %v5244_v23 = vmax.f32 %v447_v20, 0.0  ;;  %v3490_v24 = vpop.f32.mrb[4].mxu1  ;;  %4408 = vmatprep.subr.bf16.mxu1 %v4407_v21  ;;  %v5352_v20 = vld [vmem:[#allocation2 + $0x78] sm:$0xff] }
 0x245   :  { %v462_v25 = vadd.f32 %v3490_v24, %v5228_v10  ;;  %v456_v26 = vpop.f32.mrb[5].mxu1  ;;  %4410 = vmatpush3.bf16.msra.mxu1 %v4407_v21  ;;  %v683_v21 = vld [vmem:[#allocation8 + $0x80] sm:$0xff]  ;;  %v684_v24 = vld [vmem:[#allocation8 + $0x88] sm:$0xff] }
 0x246   :  { %v457_v27 = vadd.f32 %v5228_v10, %v456_v26  ;;  %3541 = vmatprep.mubr.f32.mxu0 %v5244_v23  ;;  %v4411_v28 = vpack.c.bf16 %v5241_v22, %v5244_v23  ;;  %v685_v26 = vld [vmem:[#allocation8 + $0x90] sm:$0xff] }
 0x247   :  { %v5251_v29 = vmax.f32 %v462_v25, 0.0  ;;  %3542 = vmatmul.mubr.f32.gmra.mrb[18].mxu0 %v5241_v22  ;;  %v4439_v25 = vpack.c.bf16 %v684_v24, %v683_v21  ;;  %v708_v24 = vld [vmem:[#allocation10 + $0xb0] sm:$0xff] }
 0x248   :  { %v5254_v30 = vmax.f32 %v457_v27, 0.0  ;;  %v3493_v31 = vpop.f32.mrb[6].mxu1  ;;  %4412 = vmatprep.subr.bf16.mxu1 %v4411_v28  ;;  %v686_v27 = vld [vmem:[#allocation8 + $0x98] sm:$0xff] }
 0x249   :  { %v472_v32 = vadd.f32 %v3493_v31, %v5228_v10  ;;  %v466_v33 = vpop.f32.mrb[7].mxu1  ;;  %4414 = vmatpush3.bf16.msra.mxu1 %v4411_v28  ;;  %4440 = vmatprep.subr.bf16.mxu0 %v4439_v25  ;;  %v4443_v28 = vpack.c.bf16 %v686_v27, %v685_v26  ;;  %v687_v31 = vld [vmem:[#allocation8 + $0xa0] sm:$0xff] }
 0x24a   :  { %v467_v34 = vadd.f32 %v5228_v10, %v466_v33  ;;  %3544 = vmatprep.mubr.f32.mxu0 %v5254_v30  ;;  %v4415_v35 = vpack.c.bf16 %v5251_v29, %v5254_v30  ;;  %4442 = vmatpush3.bf16.msra.mxu0 %v4439_v25  ;;  %v709_v25 = vld [vmem:[#allocation10 + $0xb8] sm:$0xff]  ;;  %v710_v27 = vld [vmem:[#allocation10 + $0xc0] sm:$0xff] }
 0x24b   :  { %v5261_v36 = vmax.f32 %v472_v32, 0.0  ;;  %3545 = vmatmul.mubr.f32.gmra.mrb[20].mxu0 %v5251_v29  ;;  %4444 = vmatprep.subr.bf16.mxu0 %v4443_v28  ;;  %v688_v32 = vld [vmem:[#allocation8 + $0xa8] sm:$0xff]  ;;  %v4483_v26 = vpack.c.bf16 %v709_v25, %v708_v24 }
 0x24c   :  { %v5264_v37 = vmax.f32 %v467_v34, 0.0  ;;  %v3496_v38 = vpop.f32.mrb[8].mxu1  ;;  %4416 = vmatprep.subr.bf16.mxu1 %v4415_v35  ;;  %v4447_v33 = vpack.c.bf16 %v688_v32, %v687_v31  ;;  %v689_v34 = vld [vmem:[#allocation8 + $0xb0] sm:$0xff] }
 0x24d   :  { %v482_v39 = vadd.f32 %v3496_v38, %v5228_v10  ;;  %v476_v40 = vpop.f32.mrb[9].mxu1  ;;  %4418 = vmatpush3.bf16.msra.mxu1 %v4415_v35  ;;  %v690_v35 = vld [vmem:[#allocation8 + $0xb8] sm:$0xff]  ;;  %v712_v32 = vld [vmem:[#allocation10 + $0xd0] sm:$0xff] }
 0x24e   :  { %v477_v41 = vadd.f32 %v5228_v10, %v476_v40  ;;  %3547 = vmatprep.mubr.f32.mxu0 %v5264_v37  ;;  %v4419_v42 = vpack.c.bf16 %v5261_v36, %v5264_v37  ;;  %4446 = vmatpush3.bf16.msra.mxu0 %v4443_v28  ;;  %v4451_v38 = vpack.c.bf16 %v690_v35, %v689_v34  ;;  %v692_v40 = vld [vmem:[#allocation8 + $0xc8] sm:$0xff]  ;;  %v714_v35 = vld [vmem:[#allocation10 + $0xe0] sm:$0xff] }
 0x24f   :  { %v5271_v43 = vmax.f32 %v482_v39, 0.0  ;;  %3548 = vmatmul.mubr.f32.gmra.mrb[22].mxu0 %v5261_v36  ;;  %4448 = vmatprep.subr.bf16.mxu0 %v4447_v33  ;;  %v691_v39 = vld [vmem:[#allocation8 + $0xc0] sm:$0xff]  ;;  %v711_v28 = vld [vmem:[#allocation10 + $0xc8] sm:$0xff] }
 0x250   :  { %v5274_v44 = vmax.f32 %v477_v41, 0.0  ;;  %v3499_v45 = vpop.f32.mrb[10].mxu1  ;;  %4420 = vmatprep.subr.bf16.mxu1 %v4419_v42  ;;  %v4455_v41 = vpack.c.bf16 %v692_v40, %v691_v39  ;;  %v4487_v31 = vpack.c.bf16 %v711_v28, %v710_v27  ;;  %v2872_v40 = vld [vmem:[%s5914_s8] ss:$0 sm:$0xff] }
 0x251   :  { %v492_v46 = vadd.f32 %v3499_v45, %v5228_v10  ;;  %v486_v47 = vpop.f32.mrb[11].mxu1  ;;  %4422 = vmatpush3.bf16.msra.mxu1 %v4419_v42  ;;  %v693_v42 = vld [vmem:[#allocation8 + $0xd0] sm:$0xff]  ;;  %v694_v45 = vld [vmem:[#allocation8 + $0xd8] sm:$0xff] }
 0x252   :  { %v487_v48 = vadd.f32 %v5228_v10, %v486_v47  ;;  %3550 = vmatprep.mubr.f32.mxu0 %v5274_v44  ;;  %v4423_v49 = vpack.c.bf16 %v5271_v43, %v5274_v44  ;;  %4450 = vmatpush3.bf16.msra.mxu0 %v4447_v33  ;;  %v695_v47 = vld [vmem:[#allocation8 + $0xe0] sm:$0xff]  ;;  %v713_v33 = vld [vmem:[#allocation10 + $0xd8] sm:$0xff] }
 0x253   :  { %v5281_v50 = vmax.f32 %v492_v46, 0.0  ;;  %3551 = vmatmul.mubr.f32.gmra.mrb[24].mxu0 %v5271_v43  ;;  %4452 = vmatprep.subr.bf16.mxu0 %v4451_v38  ;;  %v4459_v46 = vpack.c.bf16 %v694_v45, %v693_v42  ;;  %v4491_v34 = vpack.c.bf16 %v713_v33, %v712_v32 }
 0x254   :  { %v5284_v51 = vmax.f32 %v487_v48, 0.0  ;;  %v3502_v52 = vpop.f32.mrb[12].mxu1  ;;  %4424 = vmatprep.subr.bf16.mxu1 %v4423_v49  ;;  %v696_v48 = vld [vmem:[#allocation8 + $0xe8] sm:$0xff] }
 0x255   :  { %v502_v53 = vadd.f32 %v3502_v52, %v5228_v10  ;;  %v496_v54 = vpop.f32.mrb[13].mxu1  ;;  %4426 = vmatpush3.bf16.msra.mxu1 %v4423_v49  ;;  %v4463_v49 = vpack.c.bf16 %v696_v48, %v695_v47  ;;  %v697_v52 = vld [vmem:[#allocation8 + $0xf0] sm:$0xff]  ;;  %v5577_v47 = vld [vmem:[#allocation7] sm:$0xff] }
 0x256   :  { %v497_v55 = vadd.f32 %v5228_v10, %v496_v54  ;;  %3553 = vmatprep.mubr.f32.mxu0 %v5284_v51  ;;  %v4427_v56 = vpack.c.bf16 %v5281_v50, %v5284_v51  ;;  %4454 = vmatpush3.bf16.msra.mxu0 %v4451_v38  ;;  %v715_v38 = vld [vmem:[#allocation10 + $0xe8] sm:$0xff] }
 0x257   :  { %v5291_v57 = vmax.f32 %v502_v53, 0.0  ;;  %3554 = vmatmul.mubr.f32.gmra.mrb[26].mxu0 %v5281_v50  ;;  %4456 = vmatprep.subr.bf16.mxu0 %v4455_v41  ;;  %v698_v53 = vld [vmem:[#allocation8 + $0xf8] sm:$0xff]  ;;  %v4495_v39 = vpack.c.bf16 %v715_v38, %v714_v35 }
 0x258   :  { %v5294_v58 = vmax.f32 %v497_v55, 0.0  ;;  %v3505_v59 = vpop.f32.mrb[14].mxu1  ;;  %4428 = vmatprep.subr.bf16.mxu1 %v4427_v56  ;;  %v4467_v54 = vpack.c.bf16 %v698_v53, %v697_v52  ;;  %v702_v55 = vld [vmem:[#allocation10 + $0x80] sm:$0xff] }
 0x259   :  { %v512_v60 = vadd.f32 %v3505_v59, %v5228_v10  ;;  %v506_v61 = vpop.f32.mrb[15].mxu1  ;;  %4430 = vmatpush3.bf16.msra.mxu1 %v4427_v56  ;;  %v703_v56 = vld [vmem:[#allocation10 + $0x88] sm:$0xff]  ;;  %v704_v59 = vld [vmem:[#allocation10 + $0x90] sm:$0xff] }
 0x25a   :  { %v507_v62 = vadd.f32 %v5228_v10, %v506_v61  ;;  %3556 = vmatprep.mubr.f32.mxu0 %v5294_v58  ;;  %v4431_v63 = vpack.c.bf16 %v5291_v57, %v5294_v58  ;;  %v5328_v10 = vld [vmem:[#allocation2 + $0x38] sm:$0xff]  ;;  %4458 = vmatpush3.bf16.msra.mxu0 %v4455_v41  ;;  %v705_v61 = vld [vmem:[#allocation10 + $0x98] sm:$0xff] }
 0x25b   :  { %v5301_v0 = vmax.f32 %v512_v60, 0.0  ;;  %3557 = vmatmul.mubr.f32.gmra.mrb[28].mxu0 %v5291_v57  ;;  %4460 = vmatprep.subr.bf16.mxu0 %v4459_v46  ;;  %v4471_v60 = vpack.c.bf16 %v703_v56, %v702_v55 }
 0x25c   :  { %v5304_v1 = vmax.f32 %v507_v62, 0.0  ;;  %4432 = vmatprep.subr.bf16.mxu1 %v4431_v63  ;;  %v4475_v62 = vpack.c.bf16 %v705_v61, %v704_v59 }
 0x25d   :  { %4434 = vmatpush3.bf16.msra.mxu1 %v4431_v63  ;;  %v706_v63 = vld [vmem:[#allocation10 + $0xa0] sm:$0xff] }
 0x25e   :  { %3559 = vmatprep.mubr.f32.mxu0 %v5304_v1  ;;  %v4435_v2 = vpack.c.bf16 %v5301_v0, %v5304_v1  ;;  %4462 = vmatpush3.bf16.msra.mxu0 %v4459_v46 }
 0x25f   :  { %3560 = vmatmul.mubr.f32.gmra.mrb[30].mxu0 %v5301_v0  ;;  %4464 = vmatprep.subr.bf16.mxu0 %v4463_v49 }
 0x260   :  { %4436 = vmatprep.subr.bf16.mxu1 %v4435_v2 }
 0x261   :  { %4438 = vmatpush3.bf16.msra.mxu1 %v4435_v2  ;;  %v707_v2 = vld [vmem:[#allocation10 + $0xa8] sm:$0xff] }
 0x262   :  { %4466 = vmatpush3.bf16.msra.mxu0 %v4463_v49  ;;  %4472 = vmatprep.subr.bf16.mxu1 %v4471_v60  ;;  %v4479_v21 = vpack.c.bf16 %v707_v2, %v706_v63 }
 0x263   :  { %4468 = vmatprep.subr.bf16.mxu0 %v4467_v54 }
 0x264   :  { %3595 = vmatmul.mubr.f32.vlgmr.msra.gmra.mrb[16].mxu1 %v5310_v3 }
 0x265   :  { %3597 = vmatprep.mubr.f32.mxu1 %v5312_v4  ;;  %4474 = vmatpush3.bf16.msra.mxu1 %v4471_v60 }
 0x266   :  { %4470 = vmatpush3.bf16.msra.mxu0 %v4467_v54  ;;  %4476 = vmatprep.subr.bf16.mxu1 %v4475_v62 }
 0x268   :  { %3598 = vmatmul.mubr.f32.gmra.mrb[18].mxu1 %v5316_v5 }
 0x269   :  { %3600 = vmatprep.mubr.f32.mxu1 %v5318_v6  ;;  %4478 = vmatpush3.bf16.msra.mxu1 %v4475_v62 }
 0x26a   :  { %4480 = vmatprep.subr.bf16.mxu1 %v4479_v21 }
 0x26c   :  { %3601 = vmatmul.mubr.f32.gmra.mrb[20].mxu1 %v5322_v7 }
 0x26d   :  { %3603 = vmatprep.mubr.f32.mxu1 %v5324_v8  ;;  %4482 = vmatpush3.bf16.msra.mxu1 %v4479_v21 }
 0x26e   :  { %4484 = vmatprep.subr.bf16.mxu1 %v4483_v26 }
 0x270   :  { %3604 = vmatmul.mubr.f32.gmra.mrb[22].mxu1 %v5328_v10 }
 0x271   :  { %3606 = vmatprep.mubr.f32.mxu1 %v5330_v11  ;;  %4486 = vmatpush3.bf16.msra.mxu1 %v4483_v26 }
 0x272   :  { %4488 = vmatprep.subr.bf16.mxu1 %v4487_v31 }
 0x274   :  { %3607 = vmatmul.mubr.f32.gmra.mrb[24].mxu1 %v5334_v12 }
 0x275   :  { %3609 = vmatprep.mubr.f32.mxu1 %v5336_v13  ;;  %4490 = vmatpush3.bf16.msra.mxu1 %v4487_v31 }
 0x276   :  { %4492 = vmatprep.subr.bf16.mxu1 %v4491_v34 }
 0x278   :  { %3610 = vmatmul.mubr.f32.gmra.mrb[26].mxu1 %v5340_v14 }
 0x279   :  { %3612 = vmatprep.mubr.f32.mxu1 %v5342_v17  ;;  %4494 = vmatpush3.bf16.msra.mxu1 %v4491_v34 }
 0x27a   :  { %4496 = vmatprep.subr.bf16.mxu1 %v4495_v39 }
 0x27c   :  { %3613 = vmatmul.mubr.f32.gmra.mrb[28].mxu1 %v5346_v18 }
 0x27d   :  { %3615 = vmatprep.mubr.f32.mxu1 %v5348_v19  ;;  %4498 = vmatpush3.bf16.msra.mxu1 %v4495_v39 }
 0x280   :  { %3616 = vmatmul.mubr.f32.gmra.mrb[30].mxu1 %v5352_v20 }
 0x316   :  { %v3540_v41 = vpop.f32.mrb[16].mxu0 }
 0x317   :  { %v5358_v42 = vadd.f32 %v3540_v41, %v2872_v40  ;;  %v603_v45 = vpop.f32.mrb[17].mxu0 }
 0x318   :  { %v5360_v46 = vadd.f32 %v2872_v40, %v603_v45 }
 0x31a   :  { %v3543_v48 = vpop.f32.mrb[18].mxu0 }
 0x31b   :  { %v5364_v49 = vadd.f32 %v3543_v48, %v2872_v40  ;;  %v613_v52 = vpop.f32.mrb[19].mxu0 }
 0x31c   :  { %v5366_v53 = vadd.f32 %v2872_v40, %v613_v52 }
 0x31e   :  { %v3546_v55 = vpop.f32.mrb[20].mxu0 }
 0x31f   :  { %v5370_v56 = vadd.f32 %v3546_v55, %v2872_v40  ;;  %v623_v59 = vpop.f32.mrb[21].mxu0 }
 0x320   :  { %v5372_v60 = vadd.f32 %v2872_v40, %v623_v59 }
 0x322   :  { %v3549_v62 = vpop.f32.mrb[22].mxu0 }
 0x323   :  { %v5376_v63 = vadd.f32 %v3549_v62, %v2872_v40  ;;  %v633_v2 = vpop.f32.mrb[23].mxu0 }
 0x324   :  { %v5378_v21 = vadd.f32 %v2872_v40, %v633_v2 }
 0x326   :  { %v3552_v25 = vpop.f32.mrb[24].mxu0 }
 0x327   :  { %v5382_v26 = vadd.f32 %v3552_v25, %v2872_v40  ;;  %v643_v27 = vpop.f32.mrb[25].mxu0 }
 0x328   :  { %v5384_v28 = vadd.f32 %v2872_v40, %v643_v27 }
 0x32a   :  { %v3555_v32 = vpop.f32.mrb[26].mxu0 }
 0x32b   :  { %v5388_v33 = vadd.f32 %v3555_v32, %v2872_v40  ;;  %v653_v34 = vpop.f32.mrb[27].mxu0 }
 0x32c   :  { %v5390_v35 = vadd.f32 %v2872_v40, %v653_v34 }
 0x32e   :  { %v3558_v39 = vpop.f32.mrb[28].mxu0 }
 0x32f   :  { %v5394_v41 = vadd.f32 %v3558_v39, %v2872_v40  ;;  %v663_v45 = vpop.f32.mrb[29].mxu0 }
 0x330   :  { %v5396_v48 = vadd.f32 %v2872_v40, %v663_v45 }
 0x332   :  { %v3561_v55 = vpop.f32.mrb[30].mxu0 }
 0x333   :  { %v5400_v59 = vadd.f32 %v3561_v55, %v2872_v40  ;;  %v673_v62 = vpop.f32.mrb[31].mxu0 }
 0x334   :  { %v5402_v2 = vadd.f32 %v2872_v40, %v673_v62 }
 0x337   :  { %v3596_v27 = vpop.f32.mrb[16].mxu1 }
 0x338   :  { %v805_v32 = vpop.f32.mrb[17].mxu1  ;;  %v885_v39 = vadd.f32 %v3596_v27, %v5232_v15 }
 0x339   :  { %v884_v34 = vadd.f32 %v805_v32, %v5234_v16 }
 0x33b   :  { %v3599_v45 = vpop.f32.mrb[18].mxu1  ;;  %3650 = vmatprep.mubr.f32.mxu0 %v884_v34 }
 0x33c   :  { %v815_v38 = vpop.f32.mrb[19].mxu1  ;;  %3651 = vmatmul.mubr.f32.vlgmr.msra.gmra.mrb[32].mxu0 %v885_v39  ;;  %v887_v55 = vadd.f32 %v3599_v45, %v5241_v22 }
 0x33d   :  { %v886_v52 = vadd.f32 %v815_v38, %v5244_v23 }
 0x33f   :  { %v3602_v31 = vpop.f32.mrb[20].mxu1  ;;  %3653 = vmatprep.mubr.f32.mxu0 %v886_v52 }
 0x340   :  { %v825_v40 = vpop.f32.mrb[21].mxu1  ;;  %3654 = vmatmul.mubr.f32.gmra.mrb[34].mxu0 %v887_v55  ;;  %v889_v25 = vadd.f32 %v3602_v31, %v5251_v29  ;;  %v5064_v55 = vmov 0.0|0.0  }
 0x341   :  { %v888_v62 = vadd.f32 %v825_v40, %v5254_v30  ;;  %4503 = vmatprep.subr.bf16.mxu0 %v5064_v55  ;;  %v721_v40 = vld [vmem:[#allocation11 + $0x80] sm:$0xff] }
 0x343   :  { %v3605_v24 = vpop.f32.mrb[22].mxu1  ;;  %3656 = vmatprep.mubr.f32.mxu0 %v888_v62  ;;  %v722_v62 = vld [vmem:[#allocation11 + $0x88] sm:$0xff] }
 0x344   :  { %v835_v16 = vpop.f32.mrb[23].mxu1  ;;  %3657 = vmatmul.mubr.f32.gmra.mrb[36].mxu0 %v889_v25  ;;  %v891_v27 = vadd.f32 %v3605_v24, %v5261_v36 }
 0x345   :  { %v890_v15 = vadd.f32 %v835_v16, %v5264_v37 }
 0x347   :  { %v3608_v32 = vpop.f32.mrb[24].mxu1  ;;  %3659 = vmatprep.mubr.f32.mxu0 %v890_v15 }
 0x348   :  { %v845_v23 = vpop.f32.mrb[25].mxu1  ;;  %3660 = vmatmul.mubr.f32.gmra.mrb[38].mxu0 %v891_v27  ;;  %v893_v38 = vadd.f32 %v3608_v32, %v5271_v43  ;;  %v4528_v32 = vpack.c.bf16 %v722_v62, %v721_v40  ;;  %v727_v40 = vld [vmem:[#allocation11 + $0xb0] sm:$0xff]  ;;  %v728_v62 = vld [vmem:[#allocation11 + $0xb8] sm:$0xff] }
 0x349   :  { %v892_v22 = vadd.f32 %v845_v23, %v5274_v44 }
 0x34b   :  { %v3611_v52 = vpop.f32.mrb[26].mxu1  ;;  %3662 = vmatprep.mubr.f32.mxu0 %v892_v22 }
 0x34c   :  { %v855_v30 = vpop.f32.mrb[27].mxu1  ;;  %3663 = vmatmul.mubr.f32.gmra.mrb[40].mxu0 %v893_v38  ;;  %v895_v31 = vadd.f32 %v3611_v52, %v5281_v50  ;;  %v717_v50 = vld [vmem:[#allocation10 + $0xf8] sm:$0xff]  ;;  %v723_v52 = vld [vmem:[#allocation11 + $0x90] sm:$0xff] }
 0x34d   :  { %v894_v29 = vadd.f32 %v855_v30, %v5284_v51  ;;  %v716_v51 = vld [vmem:[#allocation10 + $0xf0] sm:$0xff]  ;;  %v724_v30 = vld [vmem:[#allocation11 + $0x98] sm:$0xff] }
 0x34e   :  { %v4499_v45 = vpack.c.bf16 %v717_v50, %v716_v51 }
 0x34f   :  { %v3614_v25 = vpop.f32.mrb[28].mxu1  ;;  %3665 = vmatprep.mubr.f32.mxu0 %v894_v29 }
 0x350   :  { %v865_v37 = vpop.f32.mrb[29].mxu1  ;;  %3666 = vmatmul.mubr.f32.gmra.mrb[42].mxu0 %v895_v31  ;;  %v897_v24 = vadd.f32 %v3614_v25, %v5291_v57  ;;  %4500 = vmatprep.subr.bf16.mxu1 %v4499_v45  ;;  %v5427_v57 = vld [vmem:[%s5910_s4 + $0x1] ss:$0 sm:$0xff] }
 0x351   :  { %v896_v36 = vadd.f32 %v865_v37, %v5294_v58  ;;  %4502 = vmatpush3.bf16.msra.mxu1 %v4499_v45  ;;  %v4531_v37 = vpack.c.bf16 %v724_v30, %v723_v52  ;;  %v729_v52 = vld [vmem:[#allocation11 + $0xc0] sm:$0xff]  ;;  %v730_v30 = vld [vmem:[#allocation11 + $0xc8] sm:$0xff] }
 0x352   :  { %4527 = vmatprep.subr.bf16.mxu1 %v5064_v55 }
 0x353   :  { %v3617_v34 = vpop.f32.mrb[30].mxu1  ;;  %3668 = vmatprep.mubr.f32.mxu0 %v896_v36 }
 0x354   :  { %v875_v44 = vpop.f32.mrb[31].mxu1  ;;  %3669 = vmatmul.mubr.f32.gmra.mrb[44].mxu0 %v897_v24  ;;  %v899_v39 = vadd.f32 %v3617_v34, %v5301_v0 }
 0x355   :  { %v898_v43 = vadd.f32 %v875_v44, %v5304_v1  ;;  %v725_v44 = vld [vmem:[#allocation11 + $0xa0] sm:$0xff] }
 0x357   :  { %3671 = vmatprep.mubr.f32.mxu0 %v898_v43  ;;  %v726_v43 = vld [vmem:[#allocation11 + $0xa8] sm:$0xff] }
 0x358   :  { %3672 = vmatmul.mubr.f32.gmra.mrb[46].mxu0 %v899_v39  ;;  %v4534_v45 = vpack.c.bf16 %v726_v43, %v725_v44  ;;  %v731_v44 = vld [vmem:[#allocation11 + $0xd0] sm:$0xff]  ;;  %v732_v43 = vld [vmem:[#allocation11 + $0xd8] sm:$0xff] }
 0x40f   :  { %v3652_v58 = vpop.f32.mrb[32].mxu0 }
 0x410   :  { %v978_v0 = vadd.f32 %v3652_v58, %v5427_v57  ;;  %v972_v1 = vpop.f32.mrb[33].mxu0 }
 0x411   :  { %v973_v16 = vadd.f32 %v5427_v57, %v972_v1 }
 0x412   :  { %v1052_v23 = vmax.f32 %v978_v0, 0.0 }
 0x413   :  { %v1051_v15 = vmax.f32 %v973_v16, 0.0  ;;  %v3655_v27 = vpop.f32.mrb[34].mxu0 }
 0x414   :  { %v988_v22 = vadd.f32 %v3655_v27, %v5427_v57  ;;  %v982_v38 = vpop.f32.mrb[35].mxu0 }
 0x415   :  { %v983_v29 = vadd.f32 %v5427_v57, %v982_v38  ;;  %3706 = vmatprep.mubr.f32.mxu1 %v1051_v15 }
 0x416   :  { %3707 = vmatmul.mubr.f32.vlgmr.msra.gmra.mrb[32].mxu1 %v1052_v23  ;;  %v1054_v36 = vmax.f32 %v988_v22, 0.0 }
 0x417   :  { %v1053_v31 = vmax.f32 %v983_v29, 0.0  ;;  %v3658_v25 = vpop.f32.mrb[36].mxu0  ;;  %4529 = vmatpush3.bf16.msra.mxu1 %v4528_v32  ;;  %v4537_v32 = vpack.c.bf16 %v728_v62, %v727_v40 }
 0x418   :  { %v998_v24 = vadd.f32 %v3658_v25, %v5427_v57  ;;  %v992_v34 = vpop.f32.mrb[37].mxu0  ;;  %4530 = vmatprep.subr.bf16.mxu1 %v5064_v55 }
 0x419   :  { %v993_v39 = vadd.f32 %v5427_v57, %v992_v34  ;;  %3709 = vmatprep.mubr.f32.mxu1 %v1053_v31 }
 0x41a   :  { %3710 = vmatmul.mubr.f32.gmra.mrb[34].mxu1 %v1054_v36  ;;  %v1056_v58 = vmax.f32 %v998_v24, 0.0 }
 0x41b   :  { %v1055_v51 = vmax.f32 %v993_v39, 0.0  ;;  %v3661_v50 = vpop.f32.mrb[38].mxu0  ;;  %4532 = vmatpush3.bf16.msra.mxu1 %v4531_v37  ;;  %v4540_v37 = vpack.c.bf16 %v730_v30, %v729_v52  ;;  %v733_v52 = vld [vmem:[#allocation11 + $0xe0] sm:$0xff]  ;;  %v734_v30 = vld [vmem:[#allocation11 + $0xe8] sm:$0xff] }
 0x41c   :  { %v1008_v0 = vadd.f32 %v3661_v50, %v5427_v57  ;;  %v1002_v1 = vpop.f32.mrb[39].mxu0  ;;  %4533 = vmatprep.subr.bf16.mxu1 %v5064_v55 }
 0x41d   :  { %v1003_v16 = vadd.f32 %v5427_v57, %v1002_v1  ;;  %3712 = vmatprep.mubr.f32.mxu1 %v1055_v51 }
 0x41e   :  { %3713 = vmatmul.mubr.f32.gmra.mrb[36].mxu1 %v1056_v58  ;;  %v1058_v23 = vmax.f32 %v1008_v0, 0.0 }
 0x41f   :  { %v1057_v15 = vmax.f32 %v1003_v16, 0.0  ;;  %v3664_v27 = vpop.f32.mrb[40].mxu0  ;;  %4535 = vmatpush3.bf16.msra.mxu1 %v4534_v45  ;;  %v4543_v45 = vpack.c.bf16 %v732_v43, %v731_v44 }
 0x420   :  { %v1018_v22 = vadd.f32 %v3664_v27, %v5427_v57  ;;  %v1012_v38 = vpop.f32.mrb[41].mxu0  ;;  %4536 = vmatprep.subr.bf16.mxu1 %v5064_v55 }
 0x421   :  { %v1013_v29 = vadd.f32 %v5427_v57, %v1012_v38  ;;  %3715 = vmatprep.mubr.f32.mxu1 %v1057_v15 }
 0x422   :  { %3716 = vmatmul.mubr.f32.gmra.mrb[38].mxu1 %v1058_v23  ;;  %v1060_v36 = vmax.f32 %v1018_v22, 0.0 }
 0x423   :  { %v1059_v31 = vmax.f32 %v1013_v29, 0.0  ;;  %v3667_v25 = vpop.f32.mrb[42].mxu0  ;;  %4538 = vmatpush3.bf16.msra.mxu1 %v4537_v32  ;;  %v4546_v29 = vpack.c.bf16 %v734_v30, %v733_v52 }
 0x424   :  { %v1028_v24 = vadd.f32 %v3667_v25, %v5427_v57  ;;  %v1022_v34 = vpop.f32.mrb[43].mxu0  ;;  %4539 = vmatprep.subr.bf16.mxu1 %v5064_v55  ;;  %v736_v25 = vld [vmem:[#allocation11 + $0xf8] sm:$0xff] }
 0x425   :  { %v1023_v39 = vadd.f32 %v5427_v57, %v1022_v34  ;;  %3718 = vmatprep.mubr.f32.mxu1 %v1059_v31  ;;  %v735_v31 = vld [vmem:[#allocation11 + $0xf0] sm:$0xff] }
 0x426   :  { %3719 = vmatmul.mubr.f32.gmra.mrb[40].mxu1 %v1060_v36  ;;  %v1062_v58 = vmax.f32 %v1028_v24, 0.0  ;;  %v5928_v36 = vmov 0.0  }
 0x427   :  { %v1061_v51 = vmax.f32 %v1023_v39, 0.0  ;;  %v3670_v50 = vpop.f32.mrb[44].mxu0  ;;  %4541 = vmatpush3.bf16.msra.mxu1 %v4540_v37  ;;  %v4549_v37 = vpack.c.bf16 %v736_v25, %v735_v31  ;;  %3762 = vmatprep.mubr.msk.f32.mxu0 %vm5065_vm0, %v5928_v36 }
 0x428   :  { %v1038_v0 = vadd.f32 %v3670_v50, %v5427_v57  ;;  %v1032_v1 = vpop.f32.mrb[45].mxu0  ;;  %4542 = vmatprep.subr.bf16.mxu1 %v5064_v55 }
 0x429   :  { %v1033_v40 = vadd.f32 %v5427_v57, %v1032_v1  ;;  %3721 = vmatprep.mubr.f32.mxu1 %v1061_v51 }
 0x42a   :  { %3722 = vmatmul.mubr.f32.gmra.mrb[42].mxu1 %v1062_v58  ;;  %v1064_v15 = vmax.f32 %v1038_v0, 0.0 }
 0x42b   :  { %v1063_v62 = vmax.f32 %v1033_v40, 0.0  ;;  %v3673_v16 = vpop.f32.mrb[46].mxu0  ;;  %4544 = vmatpush3.bf16.msra.mxu1 %v4543_v45 }
 0x42c   :  { %v1048_v27 = vadd.f32 %v3673_v16, %v5427_v57  ;;  %v1042_v32 = vpop.f32.mrb[47].mxu0  ;;  %4545 = vmatprep.subr.bf16.mxu1 %v5064_v55 }
 0x42d   :  { %v1043_v23 = vadd.f32 %v5427_v57, %v1042_v32  ;;  %3724 = vmatprep.mubr.f32.mxu1 %v1063_v62  ;;  %v5459_v57 = vld [vmem:[%s5912_s6 + $0x1] ss:$0 sm:$0xff] }
 0x42e   :  { %3725 = vmatmul.mubr.f32.gmra.mrb[44].mxu1 %v1064_v15  ;;  %v1066_v38 = vmax.f32 %v1048_v27, 0.0 }
 0x42f   :  { %v1065_v22 = vmax.f32 %v1043_v23, 0.0  ;;  %4547 = vmatpush3.bf16.msra.mxu1 %v4546_v29 }
 0x430   :  { %4548 = vmatprep.subr.bf16.mxu1 %v5064_v55 }
 0x431   :  { %3727 = vmatprep.mubr.f32.mxu1 %v1065_v22 }
 0x432   :  { %3728 = vmatmul.mubr.f32.gmra.mrb[46].mxu1 %v1066_v38 }
 0x433   :  { %4550 = vmatpush3.bf16.msra.mxu1 %v4549_v37  ;;  %3797 = vmatprep.mubr.msk.f32.mxu1 %vm5065_vm0, %v5928_v36 }
 0x4e9   :  { %v3708_v24 = vpop.f32.mrb[32].mxu1 }
 0x4ea   :  { %v5462_v34 = vadd.f32 %v3708_v24, %v5459_v57  ;;  %v1139_v44 = vpop.f32.mrb[33].mxu1 }
 0x4eb   :  { %v5465_v43 = vadd.f32 %v5459_v57, %v1139_v44 }
 0x4ec   :  { %v5922_v39 = vmax.f32 %v5462_v34, 0.0 }
 0x4ed   :  { %v5925_v51 = vmax.f32 %v5465_v43, 0.0  ;;  %v3711_v50 = vpop.f32.mrb[34].mxu1 }
 0x4ee   :  { %v5470_v45 = vadd.f32 %v3711_v50, %v5459_v57  ;;  %v1149_v58 = vpop.f32.mrb[35].mxu1 }
 0x4ef   :  { %v5476_v0 = vpack.c.bf16 %v5922_v39, %v5925_v51  ;;  %v5479_v1 = vadd.f32 %v5459_v57, %v1149_v58 }
 0x4f0   :  { %v5920_v40 = vmax.f32 %v5470_v45, 0.0 }
 0x4f1   :  { %v5921_v62 = vmax.f32 %v5479_v1, 0.0  ;;  %v3714_v16 = vpop.f32.mrb[36].mxu1  ;;  %4505 = vmatpush3.bf16.msra.mxu0 %v5476_v0  ;;  %4576 = vmatprep.subr.bf16.mxu1 %v5476_v0 }
 0x4f2   :  { %v5486_v15 = vadd.f32 %v3714_v16, %v5459_v57  ;;  %v1159_v27 = vpop.f32.mrb[37].mxu1  ;;  %4506 = vmatprep.subr.bf16.mxu0 %v5064_v55 }
 0x4f3   :  { %v5493_v32 = vpack.c.bf16 %v5920_v40, %v5921_v62  ;;  %v5496_v23 = vadd.f32 %v5459_v57, %v1159_v27 }
 0x4f4   :  { %v5916_v22 = vmax.f32 %v5486_v15, 0.0 }
 0x4f5   :  { %v5917_v38 = vmax.f32 %v5496_v23, 0.0  ;;  %v3717_v52 = vpop.f32.mrb[38].mxu1  ;;  %4508 = vmatpush3.bf16.msra.mxu0 %v5493_v32 }
 0x4f6   :  { %v5502_v30 = vadd.f32 %v3717_v52, %v5459_v57  ;;  %v1169_v29 = vpop.f32.mrb[39].mxu1  ;;  %4509 = vmatprep.subr.bf16.mxu0 %v5064_v55 }
 0x4f7   :  { %v5509_v31 = vpack.c.bf16 %v5916_v22, %v5917_v38  ;;  %v5512_v25 = vadd.f32 %v5459_v57, %v1169_v29 }
 0x4f8   :  { %v5918_v37 = vmax.f32 %v5502_v30, 0.0 }
 0x4f9   :  { %v5919_v24 = vmax.f32 %v5512_v25, 0.0  ;;  %v3720_v44 = vpop.f32.mrb[40].mxu1  ;;  %4511 = vmatpush3.bf16.msra.mxu0 %v5509_v31 }
 0x4fa   :  { %v5518_v50 = vadd.f32 %v3720_v44, %v5459_v57  ;;  %v1179_v58 = vpop.f32.mrb[41].mxu1  ;;  %4512 = vmatprep.subr.bf16.mxu0 %v5064_v55 }
 0x4fb   :  { %v5525_v16 = vpack.c.bf16 %v5918_v37, %v5919_v24  ;;  %v5528_v27 = vadd.f32 %v5459_v57, %v1179_v58 }
 0x4fc   :  { %v5923_v52 = vmax.f32 %v5518_v50, 0.0 }
 0x4fd   :  { %v5924_v29 = vmax.f32 %v5528_v27, 0.0  ;;  %v3723_v22 = vpop.f32.mrb[42].mxu1  ;;  %4514 = vmatpush3.bf16.msra.mxu0 %v5525_v16 }
 0x4fe   :  { %v5534_v44 = vadd.f32 %v3723_v22, %v5459_v57  ;;  %v1189_v38 = vpop.f32.mrb[43].mxu1  ;;  %4515 = vmatprep.subr.bf16.mxu0 %v5064_v55 }
 0x4ff   :  { %v4516_v37 = vpack.c.bf16 %v5923_v52, %v5924_v29  ;;  %v5542_v58 = vadd.f32 %v5459_v57, %v1189_v38 }
 0x500   :  { %v5926_v24 = vmax.f32 %v5534_v44, 0.0 }
 0x501   :  { %v5927_v40 = vmax.f32 %v5542_v58, 0.0  ;;  %v3726_v62 = vpop.f32.mrb[44].mxu1  ;;  %4517 = vmatpush3.bf16.msra.mxu0 %v4516_v37 }
 0x502   :  { %v5547_v22 = vadd.f32 %v3726_v62, %v5459_v57  ;;  %v1199_v39 = vpop.f32.mrb[45].mxu1  ;;  %4518 = vmatprep.subr.bf16.mxu0 %v5064_v55 }
 0x503   :  { %v4519_v52 = vpack.c.bf16 %v5926_v24, %v5927_v40  ;;  %v5555_v38 = vadd.f32 %v5459_v57, %v1199_v39 }
 0x504   :  { %v5930_v29 = vmax.f32 %v5547_v22, 0.0 }
 0x505   :  { %v1230_v51 = vmax.f32 %v5555_v38, 0.0  ;;  %v3729_v61 = vpop.f32.mrb[46].mxu1  ;;  %4520 = vmatpush3.bf16.msra.mxu0 %v4519_v52  ;;  %v1485_v38 = vld [vmem:[#allocation10 + $0x170] sm:$0xff] }
 0x506   :  { %v5560_v62 = vadd.f32 %v3729_v61, %v5459_v57  ;;  %v1209_v54 = vpop.f32.mrb[47].mxu1  ;;  %4521 = vmatprep.subr.bf16.mxu0 %v5064_v55 }
 0x507   :  { %v4522_v24 = vpack.c.bf16 %v5930_v29, %v1230_v51  ;;  %v5568_v39 = vadd.f32 %v5459_v57, %v1209_v54  ;;  %v5932_v54 = vpack.c.bf16 %v5358_v42, %v5360_v46  ;;  %v5933_v57 = vmov 0.0  }
 0x508   :  { %v5931_v40 = vmax.f32 %v5560_v62, 0.0  ;;  %v5934_v29 = vpack.c.bf16 %v5364_v49, %v5366_v53  ;;  %v5936_v42 = vpack.c.bf16 %v5376_v63, %v5378_v21  ;;  %v5937_v46 = vpack.c.bf16 %v5382_v26, %v5384_v28  ;;  %v1462_v26 = vld [vmem:[#allocation8 + $0x150] sm:$0xff]  ;;  %v1463_v28 = vld [vmem:[#allocation8 + $0x158] sm:$0xff] }
 0x509   :  { %v1232_v36 = vmax.f32 %v5568_v39, 0.0  ;;  %4523 = vmatpush3.bf16.msra.mxu0 %v4522_v24  ;;  %v5938_v49 = vpack.c.bf16 %v5388_v33, %v5390_v35  ;;  %v5939_v53 = vpack.c.bf16 %v5394_v41, %v5396_v48  ;;  %v4627_v33 = vpack.c.bf16 %v1463_v28, %v1462_v26  ;;  %v1464_v35 = vld [vmem:[#allocation8 + $0x160] sm:$0xff]  ;;  %v1465_v41 = vld [vmem:[#allocation8 + $0x168] sm:$0xff] }
 0x50a   :  { %4524 = vmatprep.subr.bf16.mxu0 %v5064_v55  ;;  %v4631_v48 = vpack.c.bf16 %v1465_v41, %v1464_v35  ;;  %v5944_v28 = vmax.f32 %v5470_v45, 0.0  ;;  %v5948_v45 = vmax.f32 %v5502_v30, 0.0  ;;  %v5952_v30 = vmax.f32 %v5534_v44, 0.0 }
 0x50b   :  { %v4525_v61 = vpack.c.bf16 %v5931_v40, %v1232_v36  ;;  %v5935_v40 = vpack.c.bf16 %v5370_v56, %v5372_v60  ;;  %v5940_v56 = vpack.c.bf16 %v5400_v59, %v5402_v2  ;;  %v1466_v59 = vld [vmem:[#allocation8 + $0x170] sm:$0xff]  ;;  %v1467_v2 = vld [vmem:[#allocation8 + $0x178] sm:$0xff]  ;;  %v5954_v44 = vmax.f32 %v5560_v62, 0.0 }
 0x50d   :  { %4526 = vmatpush3.bf16.msra.mxu0 %v4525_v61 }
 0x50e   :  { %4551 = vmatprep.subr.bf16.mxu0 %v5064_v55 }
 0x510   :  { %3763 = vmatmul.mubr.f32.vlgmr.msra.gmra.mrb[48].mxu0 %v5577_v47 }
 0x511   :  { %4553 = vmatpush3.bf16.msra.mxu0 %v5932_v54  ;;  %3832 = vmatprep.mubr.msk.f32.mxu0 %vm5065_vm0, %v5933_v57  ;;  %v1477_v54 = vld [vmem:[#allocation10 + $0x130] sm:$0xff] }
 0x512   :  { %4554 = vmatprep.subr.bf16.mxu0 %v5064_v55 }
 0x515   :  { %4556 = vmatpush3.bf16.msra.mxu0 %v5934_v29  ;;  %v1476_v29 = vld [vmem:[#allocation10 + $0x128] sm:$0xff] }
 0x516   :  { %4557 = vmatprep.subr.bf16.mxu0 %v5064_v55 }
 0x519   :  { %4559 = vmatpush3.bf16.msra.mxu0 %v5935_v40  ;;  %v1471_v40 = vld [vmem:[#allocation10 + $0x100] sm:$0xff] }
 0x51a   :  { %4560 = vmatprep.subr.bf16.mxu0 %v5064_v55 }
 0x51d   :  { %4562 = vmatpush3.bf16.msra.mxu0 %v5936_v42  ;;  %v1478_v42 = vld [vmem:[#allocation10 + $0x138] sm:$0xff] }
 0x51e   :  { %4563 = vmatprep.subr.bf16.mxu0 %v5064_v55 }
 0x521   :  { %4565 = vmatpush3.bf16.msra.mxu0 %v5937_v46  ;;  %v4651_v46 = vpack.c.bf16 %v1478_v42, %v1477_v54 }
 0x522   :  { %4566 = vmatprep.subr.bf16.mxu0 %v5064_v55 }
 0x525   :  { %4568 = vmatpush3.bf16.msra.mxu0 %v5938_v49  ;;  %v1479_v49 = vld [vmem:[#allocation10 + $0x140] sm:$0xff] }
 0x526   :  { %4569 = vmatprep.subr.bf16.mxu0 %v5064_v55 }
 0x529   :  { %4571 = vmatpush3.bf16.msra.mxu0 %v5939_v53  ;;  %v1480_v53 = vld [vmem:[#allocation10 + $0x148] sm:$0xff] }
 0x52a   :  { %4572 = vmatprep.subr.bf16.mxu0 %v5064_v55 }
 0x52d   :  { %4574 = vmatpush3.bf16.msra.mxu0 %v5940_v56  ;;  %v4655_v56 = vpack.c.bf16 %v1480_v53, %v1479_v49 }
 0x530   :  { %3833 = vmatmul.mubr.f32.vlgmr.msra.gmra.mrb[50].mxu0 %v5577_v47 }
 0x5e3   :  { %v1300_v60 = vpop.f32.mrb[48].mxu0 }
 0x5e4   :  { %v3764_v63 = vpop.f32.mrb[49].mxu0  ;;  %3798 = vmatmul.mubr.f32.vlgmr.msra.gmra.mrb[48].mxu1 %v1300_v60  ;;  %v1481_v60 = vld [vmem:[#allocation10 + $0x150] sm:$0xff] }
 0x5e5   :  { %4578 = vmatpush3.bf16.msra.mxu1 %v5476_v0  ;;  %3867 = vmatprep.mubr.f32.mxu1 %v5222_v9  ;;  %v4635_v0 = vpack.c.bf16 %v1467_v2, %v1466_v59  ;;  %v1482_v63 = vld [vmem:[#allocation10 + $0x158] sm:$0xff] }
 0x5e6   :  { %4580 = vmatprep.subr.bf16.mxu1 %v5493_v32 }
 0x5e9   :  { %4582 = vmatpush3.bf16.msra.mxu1 %v5493_v32  ;;  %v1472_v32 = vld [vmem:[#allocation10 + $0x108] sm:$0xff] }
 0x5ea   :  { %4584 = vmatprep.subr.bf16.mxu1 %v5509_v31 }
 0x5ed   :  { %4586 = vmatpush3.bf16.msra.mxu1 %v5509_v31  ;;  %v1473_v31 = vld [vmem:[#allocation10 + $0x110] sm:$0xff] }
 0x5ee   :  { %4588 = vmatprep.subr.bf16.mxu1 %v5525_v16 }
 0x5f1   :  { %4590 = vmatpush3.bf16.msra.mxu1 %v5525_v16 }
 0x5f2   :  { %4592 = vmatprep.subr.bf16.mxu1 %v4516_v37 }
 0x5f5   :  { %4594 = vmatpush3.bf16.msra.mxu1 %v4516_v37  ;;  %v4639_v37 = vpack.c.bf16 %v1472_v32, %v1471_v40 }
 0x5f6   :  { %4596 = vmatprep.subr.bf16.mxu1 %v4519_v52 }
 0x5f9   :  { %4598 = vmatpush3.bf16.msra.mxu1 %v4519_v52  ;;  %v1475_v52 = vld [vmem:[#allocation10 + $0x120] sm:$0xff] }
 0x5fa   :  { %4600 = vmatprep.subr.bf16.mxu1 %v4522_v24 }
 0x5fd   :  { %4602 = vmatpush3.bf16.msra.mxu1 %v4522_v24  ;;  %v1474_v24 = vld [vmem:[#allocation10 + $0x118] sm:$0xff] }
 0x5fe   :  { %4604 = vmatprep.subr.bf16.mxu1 %v4525_v61  ;;  %v4643_v16 = vpack.c.bf16 %v1474_v24, %v1473_v31 }
 0x601   :  { %4606 = vmatpush3.bf16.msra.mxu1 %v4525_v61  ;;  %v4647_v61 = vpack.c.bf16 %v1476_v29, %v1475_v52 }
 0x602   :  { %4640 = vmatprep.subr.bf16.mxu1 %v4639_v37 }
 0x603   :  { %v5638_v9 = vpop.f32.mrb[50].mxu0 }
 0x604   :  { %3868 = vmatmul.mubr.f32.vlgmr.msra.gmra.mrb[50].mxu1 %v5310_v3  ;;  %v1452_v3 = vld [vmem:[#allocation8 + $0x100] sm:$0xff] }
 0x605   :  { %3870 = vmatprep.mubr.f32.mxu1 %v5312_v4  ;;  %v1453_v4 = vld [vmem:[#allocation8 + $0x108] sm:$0xff]  ;;  %4642 = vmatpush3.bf16.msra.mxu1 %v4639_v37 }
 0x606   :  { %4644 = vmatprep.subr.bf16.mxu1 %v4643_v16 }
 0x608   :  { %3871 = vmatmul.mubr.f32.gmra.mrb[52].mxu1 %v5316_v5  ;;  %v1454_v5 = vld [vmem:[#allocation8 + $0x110] sm:$0xff] }
 0x609   :  { %3873 = vmatprep.mubr.f32.mxu1 %v5318_v6  ;;  %v3834_v6 = vpop.f32.mrb[51].mxu0  ;;  %4646 = vmatpush3.bf16.msra.mxu1 %v4643_v16 }
 0x60a   :  { %4648 = vmatprep.subr.bf16.mxu1 %v4647_v61 }
 0x60c   :  { %3874 = vmatmul.mubr.f32.gmra.mrb[54].mxu1 %v5322_v7  ;;  %v4607_v7 = vpack.c.bf16 %v1453_v4, %v1452_v3  ;;  %v4659_v3 = vpack.c.bf16 %v1482_v63, %v1481_v60  ;;  %v1483_v4 = vld [vmem:[#allocation10 + $0x160] sm:$0xff] }
 0x60d   :  { %3876 = vmatprep.mubr.f32.mxu1 %v5324_v8  ;;  %v1455_v8 = vld [vmem:[#allocation8 + $0x118] sm:$0xff]  ;;  %4650 = vmatpush3.bf16.msra.mxu1 %v4647_v61 }
 0x60e   :  { %4608 = vmatprep.subr.bf16.mxu0 %v4607_v7  ;;  %4652 = vmatprep.subr.bf16.mxu1 %v4651_v46 }
 0x60f   :  { %4610 = vmatpush3.bf16.msra.mxu0 %v4607_v7 }
 0x610   :  { %3877 = vmatmul.mubr.f32.gmra.mrb[56].mxu1 %v5328_v10  ;;  %v4611_v10 = vpack.c.bf16 %v1455_v8, %v1454_v5  ;;  %v1484_v5 = vld [vmem:[#allocation10 + $0x168] sm:$0xff] }
 0x611   :  { %3879 = vmatprep.mubr.f32.mxu1 %v5330_v11  ;;  %v1456_v11 = vld [vmem:[#allocation8 + $0x120] sm:$0xff]  ;;  %4654 = vmatpush3.bf16.msra.mxu1 %v4651_v46  ;;  %v4663_v6 = vpack.c.bf16 %v1484_v5, %v1483_v4 }
 0x612   :  { %4612 = vmatprep.subr.bf16.mxu0 %v4611_v10  ;;  %4656 = vmatprep.subr.bf16.mxu1 %v4655_v56 }
 0x613   :  { %4614 = vmatpush3.bf16.msra.mxu0 %v4611_v10 }
 0x614   :  { %3880 = vmatmul.mubr.f32.gmra.mrb[58].mxu1 %v5334_v12  ;;  %v1457_v12 = vld [vmem:[#allocation8 + $0x128] sm:$0xff] }
 0x615   :  { %3882 = vmatprep.mubr.f32.mxu1 %v5336_v13  ;;  %v4615_v13 = vpack.c.bf16 %v1457_v12, %v1456_v11  ;;  %4658 = vmatpush3.bf16.msra.mxu1 %v4655_v56 }
 0x616   :  { %4660 = vmatprep.subr.bf16.mxu1 %v4659_v3 }
 0x617   :  { %4616 = vmatprep.subr.bf16.mxu0 %v4615_v13 }
 0x618   :  { %3883 = vmatmul.mubr.f32.gmra.mrb[60].mxu1 %v5340_v14  ;;  %v1458_v14 = vld [vmem:[#allocation8 + $0x130] sm:$0xff]  ;;  %4618 = vmatpush3.bf16.msra.mxu0 %v4615_v13  ;;  %v5941_v13 = vmax.f32 %v5465_v43, 0.0  ;;  %v5945_v43 = vmax.f32 %v5496_v23, 0.0  ;;  %v5949_v23 = vmax.f32 %v5528_v27, 0.0 }
 0x619   :  { %3885 = vmatprep.mubr.f32.mxu1 %v5342_v17  ;;  %v1459_v17 = vld [vmem:[#allocation8 + $0x138] sm:$0xff]  ;;  %4662 = vmatpush3.bf16.msra.mxu1 %v4659_v3 }
 0x61a   :  { %4664 = vmatprep.subr.bf16.mxu1 %v4663_v6 }
 0x61c   :  { %3886 = vmatmul.mubr.f32.gmra.mrb[62].mxu1 %v5346_v18  ;;  %v4619_v18 = vpack.c.bf16 %v1459_v17, %v1458_v14  ;;  %v5942_v17 = vmax.f32 %v5462_v34, 0.0  ;;  %v5946_v34 = vmax.f32 %v5486_v15, 0.0  ;;  %v5950_v15 = vmax.f32 %v5518_v50, 0.0 }
 0x61d   :  { %3888 = vmatprep.mubr.f32.mxu1 %v5348_v19  ;;  %v1460_v19 = vld [vmem:[#allocation8 + $0x140] sm:$0xff]  ;;  %4666 = vmatpush3.bf16.msra.mxu1 %v4663_v6  ;;  %v5953_v50 = vmax.f32 %v5547_v22, 0.0  ;;  %v2882_v22 = vld [vmem:[%s5910_s4 + $0x2] ss:$0 sm:$0xff] }
 0x61e   :  { %4620 = vmatprep.subr.bf16.mxu0 %v4619_v18 }
 0x61f   :  { %4622 = vmatpush3.bf16.msra.mxu0 %v4619_v18 }
 0x620   :  { %3889 = vmatmul.mubr.f32.gmra.mrb[64].mxu1 %v5352_v20  ;;  %v1461_v20 = vld [vmem:[#allocation8 + $0x148] sm:$0xff] }
 0x621   :  { %v4623_v21 = vpack.c.bf16 %v1461_v20, %v1460_v19 }
 0x623   :  { %4624 = vmatprep.subr.bf16.mxu0 %v4623_v21 }
 0x624   :  { %4626 = vmatpush3.bf16.msra.mxu0 %v4623_v21  ;;  %v5943_v21 = vmax.f32 %v5479_v1, 0.0  ;;  %v5947_v1 = vmax.f32 %v5512_v25, 0.0  ;;  %v5951_v25 = vmax.f32 %v5542_v58, 0.0 }
 0x625   :  { %4628 = vmatprep.subr.bf16.mxu0 %v4627_v33 }
 0x628   :  { %4630 = vmatpush3.bf16.msra.mxu0 %v4627_v33 }
 0x629   :  { %4632 = vmatprep.subr.bf16.mxu0 %v4631_v48 }
 0x62c   :  { %4634 = vmatpush3.bf16.msra.mxu0 %v4631_v48 }
 0x62d   :  { %4636 = vmatprep.subr.bf16.mxu0 %v4635_v0 }
 0x630   :  { %4638 = vmatpush3.bf16.msra.mxu0 %v4635_v0 }
 0x631   :  { %4671 = vmatprep.subr.bf16.mxu0 %v5064_v55 }
 0x6b7   :  { %v1370_v7 = vpop.f32.mrb[48].mxu1 }
 0x6b8   :  { %v5642_v8 = vadd.f32 %v5638_v9, %v1370_v7  ;;  %v3799_v10 = vpop.f32.mrb[49].mxu1 }
 0x6d7   :  { %v3869_v11 = vpop.f32.mrb[50].mxu1 }
 0x6d8   :  { %v1574_v12 = vpop.f32.mrb[51].mxu1  ;;  %v1654_v18 = vadd.f32 %v3869_v11, %v5942_v17 }
 0x6d9   :  { %v1653_v14 = vadd.f32 %v1574_v12, %v5941_v13 }
 0x6db   :  { %v3872_v19 = vpop.f32.mrb[52].mxu1  ;;  %3923 = vmatprep.mubr.f32.mxu0 %v1653_v14 }
 0x6dc   :  { %v1584_v20 = vpop.f32.mrb[53].mxu1  ;;  %3924 = vmatmul.mubr.f32.vlgmr.msra.gmra.mrb[52].mxu0 %v1654_v18  ;;  %v1656_v9 = vadd.f32 %v3872_v19, %v5944_v28 }
 0x6dd   :  { %v1655_v26 = vadd.f32 %v1584_v20, %v5943_v21 }
 0x6df   :  { %v3875_v33 = vpop.f32.mrb[54].mxu1  ;;  %3926 = vmatprep.mubr.f32.mxu0 %v1655_v26 }
 0x6e0   :  { %v1594_v35 = vpop.f32.mrb[55].mxu1  ;;  %3927 = vmatmul.mubr.f32.gmra.mrb[54].mxu0 %v1656_v9  ;;  %v1658_v48 = vadd.f32 %v3875_v33, %v5946_v34 }
 0x6e1   :  { %v1657_v41 = vadd.f32 %v1594_v35, %v5945_v43 }
 0x6e3   :  { %v3878_v59 = vpop.f32.mrb[56].mxu1  ;;  %3929 = vmatprep.mubr.f32.mxu0 %v1657_v41 }
 0x6e4   :  { %v1604_v2 = vpop.f32.mrb[57].mxu1  ;;  %3930 = vmatmul.mubr.f32.gmra.mrb[56].mxu0 %v1658_v48  ;;  %v1660_v40 = vadd.f32 %v3878_v59, %v5948_v45 }
 0x6e5   :  { %v1659_v0 = vadd.f32 %v1604_v2, %v5947_v1 }
 0x6e7   :  { %v3881_v32 = vpop.f32.mrb[58].mxu1  ;;  %3932 = vmatprep.mubr.f32.mxu0 %v1659_v0 }
 0x6e8   :  { %v1614_v31 = vpop.f32.mrb[59].mxu1  ;;  %3933 = vmatmul.mubr.f32.gmra.mrb[58].mxu0 %v1660_v40  ;;  %v1662_v24 = vadd.f32 %v3881_v32, %v5950_v15 }
 0x6e9   :  { %v1661_v37 = vadd.f32 %v1614_v31, %v5949_v23 }
 0x6eb   :  { %v3884_v16 = vpop.f32.mrb[60].mxu1  ;;  %3935 = vmatprep.mubr.f32.mxu0 %v1661_v37 }
 0x6ec   :  { %v1624_v52 = vpop.f32.mrb[61].mxu1  ;;  %3936 = vmatmul.mubr.f32.gmra.mrb[60].mxu0 %v1662_v24  ;;  %v1664_v61 = vadd.f32 %v3884_v16, %v5952_v30 }
 0x6ed   :  { %v1663_v29 = vadd.f32 %v1624_v52, %v5951_v25 }
 0x6ef   :  { %v3887_v54 = vpop.f32.mrb[62].mxu1  ;;  %3938 = vmatprep.mubr.f32.mxu0 %v1663_v29 }
 0x6f0   :  { %v1634_v42 = vpop.f32.mrb[63].mxu1  ;;  %3939 = vmatmul.mubr.f32.gmra.mrb[62].mxu0 %v1664_v61  ;;  %v1666_v46 = vadd.f32 %v3887_v54, %v5953_v50  ;;  %v1491_v50 = vld [vmem:[#allocation11 + $0x108] sm:$0xff] }
 0x6f1   :  { %v1665_v27 = vadd.f32 %v1634_v42, %v1230_v51  ;;  %v1486_v51 = vld [vmem:[#allocation10 + $0x178] sm:$0xff] }
 0x6f2   :  { %v4667_v60 = vpack.c.bf16 %v1486_v51, %v1485_v38  ;;  %v1496_v51 = vld [vmem:[#allocation11 + $0x130] sm:$0xff] }
 0x6f3   :  { %v3890_v49 = vpop.f32.mrb[64].mxu1  ;;  %3941 = vmatprep.mubr.f32.mxu0 %v1665_v27  ;;  %v1490_v27 = vld [vmem:[#allocation11 + $0x100] sm:$0xff] }
 0x6f4   :  { %v1644_v53 = vpop.f32.mrb[65].mxu1  ;;  %3942 = vmatmul.mubr.f32.gmra.mrb[64].mxu0 %v1666_v46  ;;  %v1668_v56 = vadd.f32 %v3890_v49, %v5954_v44  ;;  %4668 = vmatprep.subr.bf16.mxu1 %v4667_v60  ;;  %v1492_v46 = vld [vmem:[#allocation11 + $0x110] sm:$0xff]  ;;  %v4696_v49 = vpack.c.bf16 %v1491_v50, %v1490_v27  ;;  %v1494_v44 = vld [vmem:[#allocation11 + $0x120] sm:$0xff] }
 0x6f5   :  { %v1667_v58 = vadd.f32 %v1644_v53, %v1232_v36  ;;  %4670 = vmatpush3.bf16.msra.mxu1 %v4667_v60  ;;  %v1493_v53 = vld [vmem:[#allocation11 + $0x118] sm:$0xff] }
 0x6f6   :  { %4695 = vmatprep.subr.bf16.mxu1 %v5064_v55  ;;  %v1497_v60 = vld [vmem:[#allocation11 + $0x138] sm:$0xff] }
 0x6f7   :  { %3944 = vmatprep.mubr.f32.mxu0 %v1667_v58  ;;  %v4699_v58 = vpack.c.bf16 %v1493_v53, %v1492_v46 }
 0x6f8   :  { %3945 = vmatmul.mubr.f32.gmra.mrb[66].mxu0 %v1668_v56  ;;  %v1495_v56 = vld [vmem:[#allocation11 + $0x128] sm:$0xff] }
 0x6f9   :  { %4035 = vmatprep.mubr.msk.f32.mxu0 %vm5065_vm0, %v5933_v57  ;;  %v4702_v38 = vpack.c.bf16 %v1495_v56, %v1494_v44 }
 0x7af   :  { %v3925_v36 = vpop.f32.mrb[52].mxu0 }
 0x7b0   :  { %v1747_v39 = vadd.f32 %v3925_v36, %v2882_v22  ;;  %v1741_v62 = vpop.f32.mrb[53].mxu0  ;;  %v1498_v36 = vld [vmem:[#allocation11 + $0x140] sm:$0xff] }
 0x7b1   :  { %v1742_v63 = vadd.f32 %v2882_v22, %v1741_v62 }
 0x7b2   :  { %v1821_v5 = vmax.f32 %v1747_v39, 0.0  ;;  %v1499_v39 = vld [vmem:[#allocation11 + $0x148] sm:$0xff] }
 0x7b3   :  { %v1820_v3 = vmax.f32 %v1742_v63, 0.0  ;;  %v3928_v4 = vpop.f32.mrb[54].mxu0  ;;  %v4708_v62 = vpack.c.bf16 %v1499_v39, %v1498_v36  ;;  %v1500_v63 = vld [vmem:[#allocation11 + $0x150] sm:$0xff] }
 0x7b4   :  { %v1757_v6 = vadd.f32 %v3928_v4, %v2882_v22  ;;  %v1751_v7 = vpop.f32.mrb[55].mxu0 }
 0x7b5   :  { %v1752_v10 = vadd.f32 %v2882_v22, %v1751_v7  ;;  %3979 = vmatprep.mubr.f32.mxu1 %v1820_v3  ;;  %v1501_v3 = vld [vmem:[#allocation11 + $0x158] sm:$0xff] }
 0x7b6   :  { %3980 = vmatmul.mubr.f32.vlgmr.msra.gmra.mrb[66].mxu1 %v1821_v5  ;;  %v1823_v13 = vmax.f32 %v1757_v6, 0.0  ;;  %v4711_v4 = vpack.c.bf16 %v1501_v3, %v1500_v63  ;;  %v1502_v5 = vld [vmem:[#allocation11 + $0x160] sm:$0xff]  ;;  %v1503_v6 = vld [vmem:[#allocation11 + $0x168] sm:$0xff] }
 0x7b7   :  { %v1822_v11 = vmax.f32 %v1752_v10, 0.0  ;;  %v3931_v12 = vpop.f32.mrb[56].mxu0  ;;  %4697 = vmatpush3.bf16.msra.mxu1 %v4696_v49  ;;  %v4714_v7 = vpack.c.bf16 %v1503_v6, %v1502_v5  ;;  %v1504_v10 = vld [vmem:[#allocation11 + $0x170] sm:$0xff] }
 0x7b8   :  { %v1767_v14 = vadd.f32 %v3931_v12, %v2882_v22  ;;  %v1761_v17 = vpop.f32.mrb[57].mxu0  ;;  %4698 = vmatprep.subr.bf16.mxu1 %v5064_v55  ;;  %v5693_v12 = vld [vmem:[%s5912_s6 + $0x2] ss:$0 sm:$0xff] }
 0x7b9   :  { %v1762_v18 = vadd.f32 %v2882_v22, %v1761_v17  ;;  %3982 = vmatprep.mubr.f32.mxu1 %v1822_v11  ;;  %v1505_v11 = vld [vmem:[#allocation11 + $0x178] sm:$0xff] }
 0x7ba   :  { %3983 = vmatmul.mubr.f32.gmra.mrb[68].mxu1 %v1823_v13  ;;  %v1825_v21 = vmax.f32 %v1767_v14, 0.0  ;;  %v4717_v13 = vpack.c.bf16 %v1505_v11, %v1504_v10  ;;  %v4875_v10 = vld [vmem:[#allocation2] sm:$0xff]  ;;  %v4876_v11 = vld [vmem:[#allocation2 + $0x8] sm:$0xff] }
 0x7bb   :  { %v1824_v19 = vmax.f32 %v1762_v18, 0.0  ;;  %v3934_v20 = vpop.f32.mrb[58].mxu0  ;;  %4700 = vmatpush3.bf16.msra.mxu1 %v4699_v58 }
 0x7bc   :  { %v1777_v26 = vadd.f32 %v3934_v20, %v2882_v22  ;;  %v1771_v28 = vpop.f32.mrb[59].mxu0  ;;  %4701 = vmatprep.subr.bf16.mxu1 %v5064_v55 }
 0x7bd   :  { %v1772_v9 = vadd.f32 %v2882_v22, %v1771_v28  ;;  %3985 = vmatprep.mubr.f32.mxu1 %v1824_v19 }
 0x7be   :  { %3986 = vmatmul.mubr.f32.gmra.mrb[70].mxu1 %v1825_v21  ;;  %v1827_v43 = vmax.f32 %v1777_v26, 0.0 }
 0x7bf   :  { %v1826_v33 = vmax.f32 %v1772_v9, 0.0  ;;  %v3937_v35 = vpop.f32.mrb[60].mxu0  ;;  %4703 = vmatpush3.bf16.msra.mxu1 %v4702_v38 }
 0x7c0   :  { %v1787_v41 = vadd.f32 %v3937_v35, %v2882_v22  ;;  %v1781_v34 = vpop.f32.mrb[61].mxu0  ;;  %4704 = vmatprep.subr.bf16.mxu1 %v5064_v55 }
 0x7c1   :  { %v1782_v48 = vadd.f32 %v2882_v22, %v1781_v34  ;;  %3988 = vmatprep.mubr.f32.mxu1 %v1826_v33 }
 0x7c2   :  { %3989 = vmatmul.mubr.f32.gmra.mrb[72].mxu1 %v1827_v43  ;;  %v1829_v1 = vmax.f32 %v1787_v41, 0.0 }
 0x7c3   :  { %v1828_v59 = vmax.f32 %v1782_v48, 0.0  ;;  %v3940_v2 = vpop.f32.mrb[62].mxu0 }
 0x7c4   :  { %v1797_v0 = vadd.f32 %v3940_v2, %v2882_v22  ;;  %v1791_v45 = vpop.f32.mrb[63].mxu0 }
 0x7c5   :  { %v1792_v40 = vadd.f32 %v2882_v22, %v1791_v45  ;;  %3991 = vmatprep.mubr.f32.mxu1 %v1828_v59 }
 0x7c6   :  { %3992 = vmatmul.mubr.f32.gmra.mrb[74].mxu1 %v1829_v1  ;;  %v1831_v23 = vmax.f32 %v1797_v0, 0.0 }
 0x7c7   :  { %v1830_v32 = vmax.f32 %v1792_v40, 0.0  ;;  %v3943_v31 = vpop.f32.mrb[64].mxu0 }
 0x7c8   :  { %v1807_v37 = vadd.f32 %v3943_v31, %v2882_v22  ;;  %v1801_v15 = vpop.f32.mrb[65].mxu0 }
 0x7c9   :  { %v1802_v24 = vadd.f32 %v2882_v22, %v1801_v15  ;;  %3994 = vmatprep.mubr.f32.mxu1 %v1830_v32 }
 0x7ca   :  { %3995 = vmatmul.mubr.f32.gmra.mrb[76].mxu1 %v1831_v23  ;;  %v1833_v25 = vmax.f32 %v1807_v37, 0.0 }
 0x7cb   :  { %v1832_v16 = vmax.f32 %v1802_v24, 0.0  ;;  %v3946_v52 = vpop.f32.mrb[66].mxu0 }
 0x7cc   :  { %v1817_v29 = vadd.f32 %v3946_v52, %v2882_v22  ;;  %v1811_v30 = vpop.f32.mrb[67].mxu0 }
 0x7cd   :  { %v1812_v61 = vadd.f32 %v2882_v22, %v1811_v30  ;;  %3997 = vmatprep.mubr.f32.mxu1 %v1832_v16  ;;  %v4705_v22 = vpack.c.bf16 %v1497_v60, %v1496_v51 }
 0x7ce   :  { %3998 = vmatmul.mubr.f32.gmra.mrb[78].mxu1 %v1833_v25  ;;  %v1835_v42 = vmax.f32 %v1817_v29, 0.0 }
 0x7cf   :  { %v1834_v54 = vmax.f32 %v1812_v61, 0.0  ;;  %4706 = vmatpush3.bf16.msra.mxu1 %v4705_v22 }
 0x7d0   :  { %4707 = vmatprep.subr.bf16.mxu1 %v5064_v55 }
 0x7d1   :  { %4000 = vmatprep.mubr.f32.mxu1 %v1834_v54 }
 0x7d2   :  { %4001 = vmatmul.mubr.f32.gmra.mrb[80].mxu1 %v1835_v42 }
 0x7d3   :  { %4070 = vmatprep.mubr.msk.f32.mxu1 %vm5065_vm0, %v5933_v57  ;;  %4709 = vmatpush3.bf16.msra.mxu1 %v4708_v62 }
 0x7d4   :  { %4710 = vmatprep.subr.bf16.mxu1 %v5064_v55 }
 0x7d7   :  { %4712 = vmatpush3.bf16.msra.mxu1 %v4711_v4 }
 0x7d8   :  { %4713 = vmatprep.subr.bf16.mxu1 %v5064_v55 }
 0x7db   :  { %4715 = vmatpush3.bf16.msra.mxu1 %v4714_v7 }
 0x7dc   :  { %4716 = vmatprep.subr.bf16.mxu1 %v5064_v55 }
 0x7df   :  { %4718 = vmatpush3.bf16.msra.mxu1 %v4717_v13  ;;  %v4879_v13 = vld [vmem:[#allocation2 + $0x20] sm:$0xff] }
 0x889   :  { %v3981_v14 = vpop.f32.mrb[66].mxu1 }
 0x88a   :  { %v5697_v17 = vadd.f32 %v3981_v14, %v5693_v12  ;;  %v1908_v18 = vpop.f32.mrb[67].mxu1  ;;  %v4880_v14 = vld [vmem:[#allocation2 + $0x28] sm:$0xff] }
 0x88b   :  { %v5700_v19 = vadd.f32 %v5693_v12, %v1908_v18  ;;  %v4881_v18 = vld [vmem:[#allocation2 + $0x30] sm:$0xff] }
 0x88c   :  { %v1988_v20 = vmax.f32 %v5697_v17, 0.0 }
 0x88d   :  { %v1987_v21 = vmax.f32 %v5700_v19, 0.0  ;;  %v3984_v26 = vpop.f32.mrb[68].mxu1 }
 0x88e   :  { %v5705_v28 = vadd.f32 %v3984_v26, %v5693_v12  ;;  %v1918_v9 = vpop.f32.mrb[69].mxu1  ;;  %v4882_v26 = vld [vmem:[#allocation2 + $0x38] sm:$0xff] }
 0x88f   :  { %v5711_v33 = vpack.c.bf16 %v1988_v20, %v1987_v21  ;;  %v5714_v35 = vadd.f32 %v5693_v12, %v1918_v9  ;;  %v4883_v9 = vld [vmem:[#allocation2 + $0x40] sm:$0xff] }
 0x890   :  { %v1990_v43 = vmax.f32 %v5705_v28, 0.0 }
 0x891   :  { %v1989_v41 = vmax.f32 %v5714_v35, 0.0  ;;  %v3987_v34 = vpop.f32.mrb[70].mxu1  ;;  %4673 = vmatpush3.bf16.msra.mxu0 %v5711_v33 }
 0x892   :  { %v5720_v48 = vadd.f32 %v3987_v34, %v5693_v12  ;;  %v1928_v59 = vpop.f32.mrb[71].mxu1  ;;  %4674 = vmatprep.subr.bf16.mxu0 %v5064_v55  ;;  %v4885_v34 = vld [vmem:[#allocation2 + $0x50] sm:$0xff] }
 0x893   :  { %v4675_v2 = vpack.c.bf16 %v1990_v43, %v1989_v41  ;;  %v5728_v1 = vadd.f32 %v5693_v12, %v1928_v59  ;;  %v4886_v59 = vld [vmem:[#allocation2 + $0x58] sm:$0xff] }
 0x894   :  { %v1992_v0 = vmax.f32 %v5720_v48, 0.0 }
 0x895   :  { %v1991_v45 = vmax.f32 %v5728_v1, 0.0  ;;  %v3990_v40 = vpop.f32.mrb[72].mxu1  ;;  %4676 = vmatpush3.bf16.msra.mxu0 %v4675_v2 }
 0x896   :  { %v5733_v32 = vadd.f32 %v3990_v40, %v5693_v12  ;;  %v1938_v31 = vpop.f32.mrb[73].mxu1  ;;  %4677 = vmatprep.subr.bf16.mxu0 %v5064_v55  ;;  %v4888_v40 = vld [vmem:[#allocation2 + $0x68] sm:$0xff] }
 0x897   :  { %v4678_v23 = vpack.c.bf16 %v1992_v0, %v1991_v45  ;;  %v5741_v37 = vadd.f32 %v5693_v12, %v1938_v31  ;;  %v4889_v31 = vld [vmem:[#allocation2 + $0x70] sm:$0xff] }
 0x898   :  { %v1994_v15 = vmax.f32 %v5733_v32, 0.0 }
 0x899   :  { %v1993_v24 = vmax.f32 %v5741_v37, 0.0  ;;  %v3993_v16 = vpop.f32.mrb[74].mxu1  ;;  %4679 = vmatpush3.bf16.msra.mxu0 %v4678_v23 }
 0x89a   :  { %v5746_v52 = vadd.f32 %v3993_v16, %v5693_v12  ;;  %v1948_v25 = vpop.f32.mrb[75].mxu1  ;;  %4680 = vmatprep.subr.bf16.mxu0 %v5064_v55  ;;  %v2152_v16 = vld [vmem:[#allocation8 + $0x180] sm:$0xff] }
 0x89b   :  { %v4681_v29 = vpack.c.bf16 %v1994_v15, %v1993_v24  ;;  %v5754_v30 = vadd.f32 %v5693_v12, %v1948_v25  ;;  %v2153_v25 = vld [vmem:[#allocation8 + $0x188] sm:$0xff] }
 0x89c   :  { %v1996_v61 = vmax.f32 %v5746_v52, 0.0 }
 0x89d   :  { %v1995_v54 = vmax.f32 %v5754_v30, 0.0  ;;  %v3996_v42 = vpop.f32.mrb[76].mxu1  ;;  %4682 = vmatpush3.bf16.msra.mxu0 %v4681_v29 }
 0x89e   :  { %v5759_v27 = vadd.f32 %v3996_v42, %v5693_v12  ;;  %v1958_v50 = vpop.f32.mrb[77].mxu1  ;;  %4683 = vmatprep.subr.bf16.mxu0 %v5064_v55  ;;  %v2154_v42 = vld [vmem:[#allocation8 + $0x190] sm:$0xff] }
 0x89f   :  { %v4684_v46 = vpack.c.bf16 %v1996_v61, %v1995_v54  ;;  %v5767_v49 = vadd.f32 %v5693_v12, %v1958_v50  ;;  %v2155_v50 = vld [vmem:[#allocation8 + $0x198] sm:$0xff] }
 0x8a0   :  { %v1998_v53 = vmax.f32 %v5759_v27, 0.0 }
 0x8a1   :  { %v1997_v58 = vmax.f32 %v5767_v49, 0.0  ;;  %v3999_v44 = vpop.f32.mrb[78].mxu1  ;;  %4685 = vmatpush3.bf16.msra.mxu0 %v4684_v46 }
 0x8a2   :  { %v5772_v56 = vadd.f32 %v3999_v44, %v5693_v12  ;;  %v1968_v38 = vpop.f32.mrb[79].mxu1  ;;  %4686 = vmatprep.subr.bf16.mxu0 %v5064_v55 }
 0x8a3   :  { %v4687_v51 = vpack.c.bf16 %v1998_v53, %v1997_v58  ;;  %v5780_v60 = vadd.f32 %v5693_v12, %v1968_v38  ;;  %v2156_v38 = vld [vmem:[#allocation8 + $0x1a0] sm:$0xff] }
 0x8a4   :  { %v2000_v22 = vmax.f32 %v5772_v56, 0.0 }
 0x8a5   :  { %v1999_v36 = vmax.f32 %v5780_v60, 0.0  ;;  %v4002_v39 = vpop.f32.mrb[80].mxu1  ;;  %4688 = vmatpush3.bf16.msra.mxu0 %v4687_v51  ;;  %v2173_v60 = vld [vmem:[#allocation10 + $0x190] sm:$0xff] }
 0x8a6   :  { %v5785_v62 = vadd.f32 %v4002_v39, %v5693_v12  ;;  %v1978_v63 = vpop.f32.mrb[81].mxu1  ;;  %4689 = vmatprep.subr.bf16.mxu0 %v5064_v55 }
 0x8a7   :  { %v4690_v3 = vpack.c.bf16 %v2000_v22, %v1999_v36  ;;  %v5793_v4 = vadd.f32 %v5693_v12, %v1978_v63  ;;  %v4878_v12 = vld [vmem:[#allocation2 + $0x18] sm:$0xff] }
 0x8a8   :  { %v2002_v5 = vmax.f32 %v5785_v62, 0.0  ;;  %v2178_v62 = vld [vmem:[#allocation10 + $0x1b8] sm:$0xff] }
 0x8a9   :  { %v2001_v6 = vmax.f32 %v5793_v4, 0.0  ;;  %4691 = vmatpush3.bf16.msra.mxu0 %v4690_v3 }
 0x8aa   :  { %4692 = vmatprep.subr.bf16.mxu0 %v5064_v55 }
 0x8ab   :  { %v4693_v7 = vpack.c.bf16 %v2002_v5, %v2001_v6 }
 0x8ad   :  { %4694 = vmatpush3.bf16.msra.mxu0 %v4693_v7 }
 0x8ae   :  { %4720 = vmatprep.subr.bf16.mxu0 %v5711_v33 }
 0x8b0   :  { %4036 = vmatmul.mubr.f32.vlgmr.msra.gmra.mrb[68].mxu0 %v5577_v47  ;;  %v4877_v47 = vld [vmem:[#allocation2 + $0x10] sm:$0xff] }
 0x8b1   :  { %4722 = vmatpush3.bf16.msra.mxu0 %v5711_v33  ;;  %4105 = vmatprep.mubr.f32.mxu0 %v4875_v10  ;;  %v4884_v33 = vld [vmem:[#allocation2 + $0x48] sm:$0xff] }
 0x8b2   :  { %4724 = vmatprep.subr.bf16.mxu0 %v4675_v2 }
 0x8b5   :  { %4726 = vmatpush3.bf16.msra.mxu0 %v4675_v2  ;;  %v4887_v2 = vld [vmem:[#allocation2 + $0x60] sm:$0xff] }
 0x8b6   :  { %4728 = vmatprep.subr.bf16.mxu0 %v4678_v23 }
 0x8b9   :  { %4730 = vmatpush3.bf16.msra.mxu0 %v4678_v23  ;;  %v4890_v23 = vld [vmem:[#allocation2 + $0x78] sm:$0xff] }
 0x8ba   :  { %4732 = vmatprep.subr.bf16.mxu0 %v4681_v29 }
 0x8bd   :  { %4734 = vmatpush3.bf16.msra.mxu0 %v4681_v29  ;;  %v4751_v29 = vpack.c.bf16 %v2153_v25, %v2152_v16 }
 0x8be   :  { %4736 = vmatprep.subr.bf16.mxu0 %v4684_v46 }
 0x8bf   :  { %4752 = vmatprep.subr.bf16.mxu1 %v4751_v29 }
 0x8c1   :  { %4738 = vmatpush3.bf16.msra.mxu0 %v4684_v46  ;;  %v4755_v46 = vpack.c.bf16 %v2155_v50, %v2154_v42 }
 0x8c2   :  { %4740 = vmatprep.subr.bf16.mxu0 %v4687_v51 }
 0x8c5   :  { %4742 = vmatpush3.bf16.msra.mxu0 %v4687_v51  ;;  %v2157_v51 = vld [vmem:[#allocation8 + $0x1a8] sm:$0xff] }
 0x8c6   :  { %4744 = vmatprep.subr.bf16.mxu0 %v4690_v3  ;;  %v4759_v63 = vpack.c.bf16 %v2157_v51, %v2156_v38  ;;  %v2175_v38 = vld [vmem:[#allocation10 + $0x1a0] sm:$0xff]  ;;  %v2176_v51 = vld [vmem:[#allocation10 + $0x1a8] sm:$0xff] }
 0x8c7   :  { %v4791_v4 = vpack.c.bf16 %v2176_v51, %v2175_v38 }
 0x8c9   :  { %4746 = vmatpush3.bf16.msra.mxu0 %v4690_v3  ;;  %v2158_v3 = vld [vmem:[#allocation8 + $0x1b0] sm:$0xff] }
 0x8ca   :  { %4748 = vmatprep.subr.bf16.mxu0 %v4693_v7 }
 0x8cd   :  { %4750 = vmatpush3.bf16.msra.mxu0 %v4693_v7  ;;  %v2159_v7 = vld [vmem:[#allocation8 + $0x1b8] sm:$0xff] }
 0x8ce   :  { %v4763_v10 = vpack.c.bf16 %v2159_v7, %v2158_v3  ;;  %v2181_v7 = vld [vmem:[#allocation10 + $0x1d0] sm:$0xff] }
 0x8d0   :  { %4106 = vmatmul.mubr.f32.vlgmr.msra.gmra.mrb[70].mxu0 %v4876_v11  ;;  %v2160_v11 = vld [vmem:[#allocation8 + $0x1c0] sm:$0xff] }
 0x8d1   :  { %4108 = vmatprep.mubr.f32.mxu0 %v4877_v47  ;;  %v2161_v47 = vld [vmem:[#allocation8 + $0x1c8] sm:$0xff] }
 0x8d4   :  { %4109 = vmatmul.mubr.f32.gmra.mrb[72].mxu0 %v4878_v12  ;;  %v4767_v12 = vpack.c.bf16 %v2161_v47, %v2160_v11  ;;  %v2183_v47 = vld [vmem:[#allocation10 + $0x1e0] sm:$0xff] }
 0x8d5   :  { %4111 = vmatprep.mubr.f32.mxu0 %v4879_v13  ;;  %v2162_v13 = vld [vmem:[#allocation8 + $0x1d0] sm:$0xff] }
 0x8d8   :  { %4112 = vmatmul.mubr.f32.gmra.mrb[74].mxu0 %v4880_v14  ;;  %v2163_v14 = vld [vmem:[#allocation8 + $0x1d8] sm:$0xff] }
 0x8d9   :  { %4114 = vmatprep.mubr.f32.mxu0 %v4881_v18  ;;  %v4771_v18 = vpack.c.bf16 %v2163_v14, %v2162_v13  ;;  %v2185_v14 = vld [vmem:[#allocation10 + $0x1f0] sm:$0xff] }
 0x8dc   :  { %4115 = vmatmul.mubr.f32.gmra.mrb[76].mxu0 %v4882_v26  ;;  %v2164_v26 = vld [vmem:[#allocation8 + $0x1e0] sm:$0xff] }
 0x8dd   :  { %4117 = vmatprep.mubr.f32.mxu0 %v4883_v9  ;;  %v2165_v9 = vld [vmem:[#allocation8 + $0x1e8] sm:$0xff] }
 0x8e0   :  { %4118 = vmatmul.mubr.f32.gmra.mrb[78].mxu0 %v4884_v33  ;;  %v4775_v33 = vpack.c.bf16 %v2165_v9, %v2164_v26  ;;  %v2878_v9 = vld [vmem:[%s5914_s8 + $0x1] ss:$0 sm:$0xff] }
 0x8e1   :  { %4120 = vmatprep.mubr.f32.mxu0 %v4885_v34  ;;  %v2166_v34 = vld [vmem:[#allocation8 + $0x1f0] sm:$0xff] }
 0x8e4   :  { %4121 = vmatmul.mubr.f32.gmra.mrb[80].mxu0 %v4886_v59  ;;  %v2167_v59 = vld [vmem:[#allocation8 + $0x1f8] sm:$0xff] }
 0x8e5   :  { %4123 = vmatprep.mubr.f32.mxu0 %v4887_v2  ;;  %v4779_v2 = vpack.c.bf16 %v2167_v59, %v2166_v34 }
 0x8e8   :  { %4124 = vmatmul.mubr.f32.gmra.mrb[82].mxu0 %v4888_v40 }
 0x8e9   :  { %4126 = vmatprep.mubr.f32.mxu0 %v4889_v31 }
 0x8ec   :  { %4127 = vmatmul.mubr.f32.gmra.mrb[84].mxu0 %v4890_v23 }
 0x983   :  { %v2069_v44 = vpop.f32.mrb[68].mxu0 }
 0x984   :  { %v4037_v39 = vpop.f32.mrb[69].mxu0  ;;  %4071 = vmatmul.mubr.f32.vlgmr.msra.gmra.mrb[82].mxu1 %v2069_v44 }
 0x985   :  { %4754 = vmatpush3.bf16.msra.mxu1 %v4751_v29  ;;  %v2179_v39 = vld [vmem:[#allocation10 + $0x1c0] sm:$0xff] }
 0x986   :  { %4756 = vmatprep.subr.bf16.mxu1 %v4755_v46 }
 0x989   :  { %4758 = vmatpush3.bf16.msra.mxu1 %v4755_v46 }
 0x98a   :  { %4760 = vmatprep.subr.bf16.mxu1 %v4759_v63 }
 0x98d   :  { %4762 = vmatpush3.bf16.msra.mxu1 %v4759_v63  ;;  %v2180_v63 = vld [vmem:[#allocation10 + $0x1c8] sm:$0xff] }
 0x98e   :  { %4764 = vmatprep.subr.bf16.mxu1 %v4763_v10  ;;  %v4799_v3 = vpack.c.bf16 %v2180_v63, %v2179_v39 }
 0x991   :  { %4766 = vmatpush3.bf16.msra.mxu1 %v4763_v10  ;;  %v2182_v10 = vld [vmem:[#allocation10 + $0x1d8] sm:$0xff] }
 0x992   :  { %4768 = vmatprep.subr.bf16.mxu1 %v4767_v12  ;;  %v4803_v11 = vpack.c.bf16 %v2182_v10, %v2181_v7  ;;  %v2190_v10 = vld [vmem:[#allocation11 + $0x180] sm:$0xff] }
 0x995   :  { %4770 = vmatpush3.bf16.msra.mxu1 %v4767_v12  ;;  %v2184_v12 = vld [vmem:[#allocation10 + $0x1e8] sm:$0xff] }
 0x996   :  { %4772 = vmatprep.subr.bf16.mxu1 %v4771_v18  ;;  %v4807_v13 = vpack.c.bf16 %v2184_v12, %v2183_v47  ;;  %v2192_v47 = vld [vmem:[#allocation11 + $0x190] sm:$0xff] }
 0x999   :  { %4774 = vmatpush3.bf16.msra.mxu1 %v4771_v18  ;;  %v2186_v18 = vld [vmem:[#allocation10 + $0x1f8] sm:$0xff] }
 0x99a   :  { %4776 = vmatprep.subr.bf16.mxu1 %v4775_v33  ;;  %v4811_v26 = vpack.c.bf16 %v2186_v18, %v2185_v14  ;;  %v2194_v18 = vld [vmem:[#allocation11 + $0x1a0] sm:$0xff] }
 0x99d   :  { %4778 = vmatpush3.bf16.msra.mxu1 %v4775_v33  ;;  %v1450_v33 = vadd.f32 %v2878_v9, %v5642_v8 }
 0x99e   :  { %4780 = vmatprep.subr.bf16.mxu1 %v4779_v2 }
 0x9a1   :  { %4782 = vmatpush3.bf16.msra.mxu1 %v4779_v2 }
 0x9a2   :  { %4815 = vmatprep.subr.bf16.mxu1 %v5064_v55 }
 0x9a3   :  { %v4107_v40 = vpop.f32.mrb[70].mxu0 }
 0x9a4   :  { %v2274_v31 = vpop.f32.mrb[71].mxu0  ;;  %v2354_v16 = vadd.f32 %v4107_v40, %v1988_v20  ;;  %v2888_v40 = vld [vmem:[%s5910_s4 + $0x3] ss:$0 sm:$0xff] }
 0x9a5   :  { %v2353_v23 = vadd.f32 %v2274_v31, %v1987_v21 }
 0x9a7   :  { %v4110_v25 = vpop.f32.mrb[72].mxu0  ;;  %4161 = vmatprep.mubr.f32.mxu1 %v2353_v23 }
 0x9a8   :  { %v2284_v29 = vpop.f32.mrb[73].mxu0  ;;  %4162 = vmatmul.mubr.f32.vlgmr.msra.gmra.mrb[84].mxu1 %v2354_v16  ;;  %v2356_v50 = vadd.f32 %v4110_v25, %v1990_v43 }
 0x9a9   :  { %v2355_v42 = vadd.f32 %v2284_v29, %v1989_v41 }
 0x9ab   :  { %v4113_v46 = vpop.f32.mrb[74].mxu0  ;;  %4164 = vmatprep.mubr.f32.mxu1 %v2355_v42 }
 0x9ac   :  { %v2294_v44 = vpop.f32.mrb[75].mxu0  ;;  %4165 = vmatmul.mubr.f32.gmra.mrb[86].mxu1 %v2356_v50  ;;  %v2358_v17 = vadd.f32 %v4113_v46, %v1992_v0 }
 0x9ad   :  { %v2357_v19 = vadd.f32 %v2294_v44, %v1991_v45 }
 0x9af   :  { %v4116_v20 = vpop.f32.mrb[76].mxu0  ;;  %4167 = vmatprep.mubr.f32.mxu1 %v2357_v19 }
 0x9b0   :  { %v2304_v21 = vpop.f32.mrb[77].mxu0  ;;  %4168 = vmatmul.mubr.f32.gmra.mrb[88].mxu1 %v2358_v17  ;;  %v2360_v28 = vadd.f32 %v4116_v20, %v1994_v15 }
 0x9b1   :  { %v2359_v35 = vadd.f32 %v2304_v21, %v1993_v24 }
 0x9b3   :  { %v4119_v43 = vpop.f32.mrb[78].mxu0  ;;  %4170 = vmatprep.mubr.f32.mxu1 %v2359_v35 }
 0x9b4   :  { %v2314_v41 = vpop.f32.mrb[79].mxu0  ;;  %4171 = vmatmul.mubr.f32.gmra.mrb[90].mxu1 %v2360_v28  ;;  %v2362_v48 = vadd.f32 %v4119_v43, %v1996_v61 }
 0x9b5   :  { %v2361_v1 = vadd.f32 %v2314_v41, %v1995_v54 }
 0x9b7   :  { %v4122_v0 = vpop.f32.mrb[80].mxu0  ;;  %4173 = vmatprep.mubr.f32.mxu1 %v2361_v1 }
 0x9b8   :  { %v2324_v45 = vpop.f32.mrb[81].mxu0  ;;  %4174 = vmatmul.mubr.f32.gmra.mrb[92].mxu1 %v2362_v48  ;;  %v2364_v32 = vadd.f32 %v4122_v0, %v1998_v53  ;;  %v2171_v53 = vld [vmem:[#allocation10 + $0x180] sm:$0xff] }
 0x9b9   :  { %v2363_v37 = vadd.f32 %v2324_v45, %v1997_v58  ;;  %v2172_v58 = vld [vmem:[#allocation10 + $0x188] sm:$0xff] }
 0x9ba   :  { %v4783_v56 = vpack.c.bf16 %v2172_v58, %v2171_v53 }
 0x9bb   :  { %v4125_v15 = vpop.f32.mrb[82].mxu0  ;;  %4176 = vmatprep.mubr.f32.mxu1 %v2363_v37 }
 0x9bc   :  { %v2334_v24 = vpop.f32.mrb[83].mxu0  ;;  %4177 = vmatmul.mubr.f32.gmra.mrb[94].mxu1 %v2364_v32  ;;  %v2366_v52 = vadd.f32 %v4125_v15, %v2000_v22  ;;  %v2174_v22 = vld [vmem:[#allocation10 + $0x198] sm:$0xff]  ;;  %4784 = vmatprep.subr.bf16.mxu0 %v4783_v56 }
 0x9bd   :  { %v2365_v30 = vadd.f32 %v2334_v24, %v1999_v36  ;;  %v4787_v36 = vpack.c.bf16 %v2174_v22, %v2173_v60  ;;  %4786 = vmatpush3.bf16.msra.mxu0 %v4783_v56 }
 0x9bf   :  { %v4128_v61 = vpop.f32.mrb[84].mxu0  ;;  %4179 = vmatprep.mubr.f32.mxu1 %v2365_v30  ;;  %4788 = vmatprep.subr.bf16.mxu0 %v4787_v36 }
 0x9c0   :  { %v2344_v54 = vpop.f32.mrb[85].mxu0  ;;  %4180 = vmatmul.mubr.f32.gmra.mrb[96].mxu1 %v2366_v52  ;;  %v2368_v27 = vadd.f32 %v4128_v61, %v2002_v5 }
 0x9c1   :  { %v2367_v49 = vadd.f32 %v2344_v54, %v2001_v6  ;;  %v2177_v6 = vld [vmem:[#allocation10 + $0x1b0] sm:$0xff]  ;;  %4790 = vmatpush3.bf16.msra.mxu0 %v4787_v36 }
 0x9c2   :  { %4792 = vmatprep.subr.bf16.mxu0 %v4791_v4  ;;  %v4795_v5 = vpack.c.bf16 %v2178_v62, %v2177_v6 }
 0x9c3   :  { %4182 = vmatprep.mubr.f32.mxu1 %v2367_v49 }
 0x9c4   :  { %4183 = vmatmul.mubr.f32.gmra.mrb[98].mxu1 %v2368_v27 }
 0x9c5   :  { %4273 = vmatprep.mubr.msk.f32.mxu1 %vm5065_vm0, %v5933_v57  ;;  %4794 = vmatpush3.bf16.msra.mxu0 %v4791_v4 }
 0x9c6   :  { %4796 = vmatprep.subr.bf16.mxu0 %v4795_v5 }
 0x9c9   :  { %4798 = vmatpush3.bf16.msra.mxu0 %v4795_v5 }
 0x9ca   :  { %4800 = vmatprep.subr.bf16.mxu0 %v4799_v3 }
 0x9cd   :  { %4802 = vmatpush3.bf16.msra.mxu0 %v4799_v3 }
 0x9ce   :  { %4804 = vmatprep.subr.bf16.mxu0 %v4803_v11 }
 0x9d1   :  { %4806 = vmatpush3.bf16.msra.mxu0 %v4803_v11  ;;  %v2191_v11 = vld [vmem:[#allocation11 + $0x188] sm:$0xff] }
 0x9d2   :  { %4808 = vmatprep.subr.bf16.mxu0 %v4807_v13  ;;  %v4840_v12 = vpack.c.bf16 %v2191_v11, %v2190_v10 }
 0x9d5   :  { %4810 = vmatpush3.bf16.msra.mxu0 %v4807_v13  ;;  %v2193_v13 = vld [vmem:[#allocation11 + $0x198] sm:$0xff] }
 0x9d6   :  { %4812 = vmatprep.subr.bf16.mxu0 %v4811_v26  ;;  %v4843_v14 = vpack.c.bf16 %v2193_v13, %v2192_v47 }
 0x9d9   :  { %4814 = vmatpush3.bf16.msra.mxu0 %v4811_v26  ;;  %v2195_v26 = vld [vmem:[#allocation11 + $0x1a8] sm:$0xff] }
 0x9da   :  { %4839 = vmatprep.subr.bf16.mxu0 %v5064_v55  ;;  %v4846_v9 = vpack.c.bf16 %v2195_v26, %v2194_v18 }
 0xa57   :  { %v2139_v34 = vpop.f32.mrb[82].mxu1 }
 0xa58   :  { %v5845_v59 = vadd.f32 %v2139_v34, %v1450_v33  ;;  %v4072_v2 = vpop.f32.mrb[83].mxu1  ;;  %v2196_v33 = vld [vmem:[#allocation11 + $0x1b0] sm:$0xff]  ;;  %v2197_v34 = vld [vmem:[#allocation11 + $0x1b8] sm:$0xff] }
 0xa59   :  { %v4849_v2 = vpack.c.bf16 %v2197_v34, %v2196_v33 }
 0xa7b   :  { %v4163_v31 = vpop.f32.mrb[84].mxu1 }
 0xa7c   :  { %v2447_v23 = vadd.f32 %v4163_v31, %v2888_v40  ;;  %v2441_v16 = vpop.f32.mrb[85].mxu1 }
 0xa7d   :  { %v2442_v25 = vadd.f32 %v2888_v40, %v2441_v16  ;;  %v2201_v16 = vld [vmem:[#allocation11 + $0x1d8] sm:$0xff] }
 0xa7e   :  { %v2521_v50 = vmax.f32 %v2447_v23, 0.0  ;;  %v2200_v23 = vld [vmem:[#allocation11 + $0x1d0] sm:$0xff] }
 0xa7f   :  { %v2520_v29 = vmax.f32 %v2442_v25, 0.0  ;;  %v4166_v42 = vpop.f32.mrb[86].mxu1  ;;  %v4855_v25 = vpack.c.bf16 %v2201_v16, %v2200_v23 }
 0xa80   :  { %v2457_v46 = vadd.f32 %v4166_v42, %v2888_v40  ;;  %v2451_v44 = vpop.f32.mrb[87].mxu1  ;;  %v2203_v42 = vld [vmem:[#allocation11 + $0x1e8] sm:$0xff] }
 0xa81   :  { %v2452_v19 = vadd.f32 %v2888_v40, %v2451_v44  ;;  %4217 = vmatprep.mubr.f32.mxu0 %v2520_v29  ;;  %v2202_v29 = vld [vmem:[#allocation11 + $0x1e0] sm:$0xff]  ;;  %v2205_v44 = vld [vmem:[#allocation11 + $0x1f8] sm:$0xff] }
 0xa82   :  { %4218 = vmatmul.mubr.f32.vlgmr.msra.gmra.mrb[86].mxu0 %v2521_v50  ;;  %v2523_v20 = vmax.f32 %v2457_v46, 0.0  ;;  %v4858_v50 = vpack.c.bf16 %v2203_v42, %v2202_v29  ;;  %v2204_v46 = vld [vmem:[#allocation11 + $0x1f0] sm:$0xff]  ;;  %v4891_v42 = vld [vmem:[#allocation7] sm:$0xff] }
 0xa83   :  { %v2522_v8 = vmax.f32 %v2452_v19, 0.0  ;;  %v4169_v17 = vpop.f32.mrb[88].mxu1  ;;  %4841 = vmatpush3.bf16.msra.mxu0 %v4840_v12  ;;  %v4861_v19 = vpack.c.bf16 %v2205_v44, %v2204_v46  ;;  %v2884_v44 = vld [vmem:[%s5914_s8 + $0x2] ss:$0 sm:$0xff] }
 0xa84   :  { %v2467_v21 = vadd.f32 %v4169_v17, %v2888_v40  ;;  %v2461_v35 = vpop.f32.mrb[89].mxu1  ;;  %4842 = vmatprep.subr.bf16.mxu0 %v5064_v55 }
 0xa85   :  { %v2462_v28 = vadd.f32 %v2888_v40, %v2461_v35  ;;  %4220 = vmatprep.mubr.f32.mxu0 %v2522_v8  ;;  %v5862_v8 = vld [vmem:[%s5912_s6 + $0x3] ss:$0 sm:$0xff] }
 0xa86   :  { %4221 = vmatmul.mubr.f32.gmra.mrb[88].mxu0 %v2523_v20  ;;  %v2525_v1 = vmax.f32 %v2467_v21, 0.0 }
 0xa87   :  { %v2524_v43 = vmax.f32 %v2462_v28, 0.0  ;;  %v4172_v41 = vpop.f32.mrb[90].mxu1  ;;  %4844 = vmatpush3.bf16.msra.mxu0 %v4843_v14 }
 0xa88   :  { %v2477_v48 = vadd.f32 %v4172_v41, %v2888_v40  ;;  %v2471_v0 = vpop.f32.mrb[91].mxu1  ;;  %4845 = vmatprep.subr.bf16.mxu0 %v5064_v55 }
 0xa89   :  { %v2472_v45 = vadd.f32 %v2888_v40, %v2471_v0  ;;  %4223 = vmatprep.mubr.f32.mxu0 %v2524_v43 }
 0xa8a   :  { %4224 = vmatmul.mubr.f32.gmra.mrb[90].mxu0 %v2525_v1  ;;  %v2527_v15 = vmax.f32 %v2477_v48, 0.0 }
 0xa8b   :  { %v2526_v37 = vmax.f32 %v2472_v45, 0.0  ;;  %v4175_v32 = vpop.f32.mrb[92].mxu1  ;;  %4847 = vmatpush3.bf16.msra.mxu0 %v4846_v9 }
 0xa8c   :  { %v2487_v24 = vadd.f32 %v4175_v32, %v2888_v40  ;;  %v2481_v30 = vpop.f32.mrb[93].mxu1  ;;  %4848 = vmatprep.subr.bf16.mxu0 %v5064_v55 }
 0xa8d   :  { %v2482_v52 = vadd.f32 %v2888_v40, %v2481_v30  ;;  %4226 = vmatprep.mubr.f32.mxu0 %v2526_v37 }
 0xa8e   :  { %4227 = vmatmul.mubr.f32.gmra.mrb[92].mxu0 %v2527_v15  ;;  %v2529_v49 = vmax.f32 %v2487_v24, 0.0 }
 0xa8f   :  { %v2528_v61 = vmax.f32 %v2482_v52, 0.0  ;;  %v4178_v54 = vpop.f32.mrb[94].mxu1  ;;  %4850 = vmatpush3.bf16.msra.mxu0 %v4849_v2 }
 0xa90   :  { %v2497_v27 = vadd.f32 %v4178_v54, %v2888_v40  ;;  %v2491_v53 = vpop.f32.mrb[95].mxu1  ;;  %4851 = vmatprep.subr.bf16.mxu0 %v5064_v55 }
 0xa91   :  { %v2492_v58 = vadd.f32 %v2888_v40, %v2491_v53  ;;  %4229 = vmatprep.mubr.f32.mxu0 %v2528_v61 }
 0xa92   :  { %4230 = vmatmul.mubr.f32.gmra.mrb[94].mxu0 %v2529_v49  ;;  %v2531_v22 = vmax.f32 %v2497_v27, 0.0 }
 0xa93   :  { %v2530_v60 = vmax.f32 %v2492_v58, 0.0  ;;  %v4181_v56 = vpop.f32.mrb[96].mxu1 }
 0xa94   :  { %v2507_v36 = vadd.f32 %v4181_v56, %v2888_v40  ;;  %v2501_v38 = vpop.f32.mrb[97].mxu1 }
 0xa95   :  { %v2502_v51 = vadd.f32 %v2888_v40, %v2501_v38  ;;  %4232 = vmatprep.mubr.f32.mxu0 %v2530_v60 }
 0xa96   :  { %4233 = vmatmul.mubr.f32.gmra.mrb[96].mxu0 %v2531_v22  ;;  %v2533_v62 = vmax.f32 %v2507_v36, 0.0 }
 0xa97   :  { %v2532_v4 = vmax.f32 %v2502_v51, 0.0  ;;  %v4184_v6 = vpop.f32.mrb[98].mxu1 }
 0xa98   :  { %v2517_v5 = vadd.f32 %v4184_v6, %v2888_v40  ;;  %v2511_v39 = vpop.f32.mrb[99].mxu1 }
 0xa99   :  { %v2512_v63 = vadd.f32 %v2888_v40, %v2511_v39  ;;  %4235 = vmatprep.mubr.f32.mxu0 %v2532_v4  ;;  %v2199_v40 = vld [vmem:[#allocation11 + $0x1c8] sm:$0xff] }
 0xa9a   :  { %4236 = vmatmul.mubr.f32.gmra.mrb[98].mxu0 %v2533_v62  ;;  %v2535_v7 = vmax.f32 %v2517_v5, 0.0 }
 0xa9b   :  { %v2534_v3 = vmax.f32 %v2512_v63, 0.0 }
 0xa9d   :  { %4238 = vmatprep.mubr.f32.mxu0 %v2534_v3 }
 0xa9e   :  { %4239 = vmatmul.mubr.f32.gmra.mrb[100].mxu0 %v2535_v7 }
 0xa9f   :  { %4308 = vmatprep.mubr.msk.f32.mxu0 %vm5065_vm0, %v5933_v57  ;;  %v2198_v57 = vld [vmem:[#allocation11 + $0x1c0] sm:$0xff] }
 0xaa0   :  { %v4852_v31 = vpack.c.bf16 %v2199_v40, %v2198_v57 }
 0xaa2   :  { %4853 = vmatpush3.bf16.msra.mxu0 %v4852_v31 }
 0xaa3   :  { %4854 = vmatprep.subr.bf16.mxu0 %v5064_v55 }
 0xaa6   :  { %4856 = vmatpush3.bf16.msra.mxu0 %v4855_v25 }
 0xaa7   :  { %4857 = vmatprep.subr.bf16.mxu0 %v5064_v55 }
 0xaaa   :  { %4859 = vmatpush3.bf16.msra.mxu0 %v4858_v50 }
 0xaab   :  { %4860 = vmatprep.subr.bf16.mxu0 %v5064_v55 }
 0xaae   :  { %4862 = vmatpush3.bf16.msra.mxu0 %v4861_v19  ;;  %v2150_v19 = vadd.f32 %v2884_v44, %v5845_v59 }
 0xb55   :  { %v4219_v17 = vpop.f32.mrb[86].mxu0 }
 0xb56   :  { %v2614_v20 = vadd.f32 %v4219_v17, %v5862_v8  ;;  %v2608_v21 = vpop.f32.mrb[87].mxu0 }
 0xb57   :  { %v2609_v35 = vadd.f32 %v5862_v8, %v2608_v21 }
 0xb58   :  { %v2688_v28 = vmax.f32 %v2614_v20, 0.0 }
 0xb59   :  { %v2687_v43 = vmax.f32 %v2609_v35, 0.0  ;;  %v4222_v41 = vpop.f32.mrb[88].mxu0 }
 0xb5a   :  { %v2624_v1 = vadd.f32 %v4222_v41, %v5862_v8  ;;  %v2618_v48 = vpop.f32.mrb[89].mxu0 }
 0xb5b   :  { %v4816_v0 = vpack.c.bf16 %v2688_v28, %v2687_v43  ;;  %v2619_v45 = vadd.f32 %v5862_v8, %v2618_v48 }
 0xb5c   :  { %v2690_v37 = vmax.f32 %v2624_v1, 0.0 }
 0xb5d   :  { %v2689_v32 = vmax.f32 %v2619_v45, 0.0  ;;  %v4225_v15 = vpop.f32.mrb[90].mxu0  ;;  %4817 = vmatpush3.bf16.msra.mxu1 %v4816_v0 }
 0xb5e   :  { %v2634_v24 = vadd.f32 %v4225_v15, %v5862_v8  ;;  %v2628_v30 = vpop.f32.mrb[91].mxu0  ;;  %4818 = vmatprep.subr.bf16.mxu1 %v5064_v55 }
 0xb5f   :  { %v4819_v52 = vpack.c.bf16 %v2690_v37, %v2689_v32  ;;  %v2629_v61 = vadd.f32 %v5862_v8, %v2628_v30 }
 0xb60   :  { %v2692_v54 = vmax.f32 %v2634_v24, 0.0 }
 0xb61   :  { %v2691_v49 = vmax.f32 %v2629_v61, 0.0  ;;  %v4228_v27 = vpop.f32.mrb[92].mxu0  ;;  %4820 = vmatpush3.bf16.msra.mxu1 %v4819_v52 }
 0xb62   :  { %v2644_v53 = vadd.f32 %v4228_v27, %v5862_v8  ;;  %v2638_v58 = vpop.f32.mrb[93].mxu0  ;;  %4821 = vmatprep.subr.bf16.mxu1 %v5064_v55 }
 0xb63   :  { %v4822_v60 = vpack.c.bf16 %v2692_v54, %v2691_v49  ;;  %v2639_v56 = vadd.f32 %v5862_v8, %v2638_v58 }
 0xb64   :  { %v2694_v22 = vmax.f32 %v2644_v53, 0.0 }
 0xb65   :  { %v2693_v36 = vmax.f32 %v2639_v56, 0.0  ;;  %v4231_v38 = vpop.f32.mrb[94].mxu0  ;;  %4823 = vmatpush3.bf16.msra.mxu1 %v4822_v60 }
 0xb66   :  { %v2654_v51 = vadd.f32 %v4231_v38, %v5862_v8  ;;  %v2648_v4 = vpop.f32.mrb[95].mxu0  ;;  %4824 = vmatprep.subr.bf16.mxu1 %v5064_v55 }
 0xb67   :  { %v4825_v6 = vpack.c.bf16 %v2694_v22, %v2693_v36  ;;  %v2649_v62 = vadd.f32 %v5862_v8, %v2648_v4 }
 0xb68   :  { %v2696_v5 = vmax.f32 %v2654_v51, 0.0 }
 0xb69   :  { %v2695_v39 = vmax.f32 %v2649_v62, 0.0  ;;  %v4234_v63 = vpop.f32.mrb[96].mxu0  ;;  %4826 = vmatpush3.bf16.msra.mxu1 %v4825_v6 }
 0xb6a   :  { %v2664_v3 = vadd.f32 %v4234_v63, %v5862_v8  ;;  %v2658_v7 = vpop.f32.mrb[97].mxu0  ;;  %4827 = vmatprep.subr.bf16.mxu1 %v5064_v55 }
 0xb6b   :  { %v4828_v10 = vpack.c.bf16 %v2696_v5, %v2695_v39  ;;  %v2659_v11 = vadd.f32 %v5862_v8, %v2658_v7 }
 0xb6c   :  { %v2698_v47 = vmax.f32 %v2664_v3, 0.0 }
 0xb6d   :  { %v2697_v12 = vmax.f32 %v2659_v11, 0.0  ;;  %v4237_v13 = vpop.f32.mrb[98].mxu0  ;;  %4829 = vmatpush3.bf16.msra.mxu1 %v4828_v10 }
 0xb6e   :  { %v2674_v14 = vadd.f32 %v4237_v13, %v5862_v8  ;;  %v2668_v18 = vpop.f32.mrb[99].mxu0  ;;  %4830 = vmatprep.subr.bf16.mxu1 %v5064_v55 }
 0xb6f   :  { %v4831_v26 = vpack.c.bf16 %v2698_v47, %v2697_v12  ;;  %v2669_v9 = vadd.f32 %v5862_v8, %v2668_v18 }
 0xb70   :  { %v2700_v33 = vmax.f32 %v2674_v14, 0.0 }
 0xb71   :  { %v2699_v34 = vmax.f32 %v2669_v9, 0.0  ;;  %v4240_v2 = vpop.f32.mrb[100].mxu0  ;;  %4832 = vmatpush3.bf16.msra.mxu1 %v4831_v26 }
 0xb72   :  { %v2684_v57 = vadd.f32 %v4240_v2, %v5862_v8  ;;  %v2678_v40 = vpop.f32.mrb[101].mxu0  ;;  %4833 = vmatprep.subr.bf16.mxu1 %v5064_v55 }
 0xb73   :  { %v4834_v31 = vpack.c.bf16 %v2700_v33, %v2699_v34  ;;  %v2679_v23 = vadd.f32 %v5862_v8, %v2678_v40  ;;  %v2890_v8 = vld [vmem:[%s5914_s8 + $0x3] ss:$0 sm:$0xff] }
 0xb74   :  { %v2702_v16 = vmax.f32 %v2684_v57, 0.0 }
 0xb75   :  { %v2701_v25 = vmax.f32 %v2679_v23, 0.0  ;;  %4835 = vmatpush3.bf16.msra.mxu1 %v4834_v31 }
 0xb76   :  { %4836 = vmatprep.subr.bf16.mxu1 %v5064_v55 }
 0xb77   :  { %v4837_v29 = vpack.c.bf16 %v2702_v16, %v2701_v25 }
 0xb79   :  { %4838 = vmatpush3.bf16.msra.mxu1 %v4837_v29 }
 0xb7c   :  { %4274 = vmatmul.mubr.f32.vlgmr.msra.gmra.mrb[100].mxu1 %v4891_v42 }
 0xc4f   :  { %v2769_v50 = vpop.f32.mrb[100].mxu1 }
 0xc50   :  { %v4275_v46 = vpop.f32.mrb[101].mxu1  ;;  %4309 = vmatmul.mubr.f32.vlgmr.msra.gmra.mrb[102].mxu0 %v2769_v50 }
 0xd23   :  { %v2839_v17 = vpop.f32.mrb[102].mxu0 }
 0xd24   :  { %v2843_v55 = vadd.f32 %v2839_v17, %v2150_v19  ;;  %v4310_v20 = vpop.f32.mrb[103].mxu0 }
 0xd26   :  { %v2850_v21 = vadd.f32 %v2890_v8, %v2843_v55 }
 0xd28   :  { %2851 = vst [vmem:[#allocation13] sm:$0xff] %v2850_v21 }
 0xd29   :  { %5035 = shalt.err (!%p5032_p10)
}
 0xd2a   :  { %s5036_s7 = scalar_lea.hbm %s5915_s9, 128 }
 0xd2b   :  { %p5037_p11 = scmp.ne.s32.totalorder %s5915_s9, %s5036_s7  ;;  %p5040_p12 = scmp.lt.u32.totalorder %s5036_s7, %s5915_s9 }
 0xd2d   :  { %p5042_p13 = pnand %p5040_p12, %p5037_p11 }
 0xd2f   :  { %5045 = shalt.err (!%p5042_p13)
}
 0xd30   :  { %2861 = dma.vmem_to_hbm [thread:$0]  %s2859_s14, 128, %s5915_s9, [#allocation4]  }
 0xd31   :  { %5054 = dma.done.wait [#allocation4], 128  }
 0xd32   :  { %5055 = vsyncadd [#allocation4], 4294967168 }
 0xd33   :  { %2865 = vsyncpa [#allocation3], 1 }
 0xd34   :  { %2866 = vsyncpa [#allocation6], 1 }
 0xd35   :  { %2867 = vsyncpa [#allocation9], 1 }
 0xd36   :  { %2868 = vsyncpa [#allocation12], 1 }
 0xd37   :  { %2869 = vsyncpa [#allocation4], 1 }

</bundles_post_ra>
